<compile_context>
chip_gen: v7x
topology: tpu7x:2x2x1
jax: 0.10.0
libtpu: 0.0.40
codegen_flags: <defaults>
</compile_context>

<pallas_src>
import jax
import jax.numpy as jnp
from jax import lax
from jax.experimental import pallas as pl
from jax.experimental.pallas import tpu as pltpu

INPUT_SIZE = 40
HIDDEN_SIZE = 3
NUM_LAYERS = 2

GP = 32                 # lanes per gate group (gate k -> lanes [k*GP, k*GP+HIDDEN_SIZE))
G_PAD = 4 * GP          # 128: padded packed-gate axis, lane-dense
SLAB_ROWS = 24          # packed small-parameter slab (multiple of 8 sublanes)


def _lstm_fc_kernel(x_ref, w_ih0_ref, p_ref, out_ref):
    """x_ref:    (1, T*TB, I)  time-major rows for this batch block (row = t*TB + b)
       w_ih0:    (I, 128)      layer-0 input weights, gate-padded & i/f/o pre-scaled
       p_ref:    (24, 128)     packed slab:
                   rows 0..2 : W_hh0 (gate-padded, scaled)
                   row  3    : b0 = b_ih0 + b_hh0 (gate-padded, scaled)
                   rows 4..9 : [W_ih1; W_hh1] (gate-padded, scaled)
                   row  10   : b1 = b_ih1 + b_hh1 (gate-padded, scaled)
                   row  11   : fc bias broadcast across all lanes
                   row  16   : fc weight (lanes 0..2); rows 17..23 zero
       out_ref:  (1, 1, TB)   lane-dense output row for this batch block
    """
    H = HIDDEN_SIZE
    TB = out_ref.shape[2]
    T = x_ref.shape[1] // TB

    P = p_ref[...]                                            # (24, 128), one load

    # ---- hoisted, recurrence-independent work ---------------------------------
    # Layer-0 input projection for ALL timesteps as one lane-dense MXU matmul with
    # the layer-0 bias folded in (no MXU work left on the serial chain).
    xp = (jnp.dot(x_ref[0], w_ih0_ref[...], preferred_element_type=jnp.float32)
          + P[3:4, :])                                        # (T*TB, 128)

    wh0 = [P[k:k + 1, :] for k in range(H)]                   # layer-0 recurrent rows
    wl1 = [P[4 + k:5 + k, :] for k in range(2 * H)]           # layer-1 [W_ih1;W_hh1] rows
    b1b = jnp.broadcast_to(P[10:11, :], (TB, G_PAD))          # hoisted bias broadcast

    def nonlin(g, c):
        # ONE whole-vreg tanh per cell: i/f/o pre-activations were pre-scaled by 0.5
        # in the wrapper so sigmoid(z) = 0.5*tanh(z/2) + 0.5; the g gate is tanh(z).
        t = jnp.tanh(g)                                       # (TB, 128), 1 EUP push
        i = 0.5 * t[:, 0 * GP:1 * GP] + 0.5                   # 32-lane aligned slices
        f = 0.5 * t[:, 1 * GP:2 * GP] + 0.5
        gg = t[:, 2 * GP:3 * GP]
        o = 0.5 * t[:, 3 * GP:4 * GP] + 0.5
        c_new = f * c + i * gg                                # (TB, GP); pad lanes stay 0
        h_new = o * jnp.tanh(c_new)                           # 1 EUP push
        return h_new, c_new

    # ---- serial recurrence, fully unrolled (T static => static slices) --------
    zeros = jnp.zeros((TB, GP), jnp.float32)
    h0, c0, h1, c1 = zeros, zeros, zeros, zeros
    for t in range(T):
        # layer 0: hoisted projection + 3 VPU broadcast-FMAs (MXU-free serial chain)
        g0 = xp[t * TB:(t + 1) * TB]
        for k in range(H):
            g0 = g0 + h0[:, k:k + 1] * wh0[k]
        h0, c0 = nonlin(g0, c0)
        # layer 1: single merged 6-term broadcast-FMA chain over [h0 | h1]
        g1 = b1b
        for k in range(H):
            g1 = g1 + h0[:, k:k + 1] * wl1[k]
        for k in range(H):
            g1 = g1 + h1[:, k:k + 1] * wl1[H + k]
        h1, c1 = nonlin(g1, c1)

    # ---- final FC, lane-dense (batch on lanes) ---------------------------------
    # out_row = fc_w @ h1^T as an A @ B^T matmul (rows 1..7 of the fc block are zero,
    # so only result row 0 is meaningful); no in-kernel transpose needed.
    fc_blk = P[16:24, 0:GP]                                   # (8, GP)
    res = lax.dot_general(fc_blk, h1, (((1,), (1,)), ((), ())),
                          preferred_element_type=jnp.float32)  # (8, TB)
    out_ref[0] = res[0:1, :] + P[11:12, 0:TB]


def _round_up(n, m):
    return ((n + m - 1) // m) * m


def _pack_gate_cols(w_t):
    """w_t: (D, 4H) with PyTorch gate blocks [i|f|g|o] along columns.
    Returns (D, 128) with gate k in lanes [k*GP, k*GP+H); i/f/o columns pre-scaled by
    0.5 for the single-tanh activation trick (sigmoid(z) = 0.5*tanh(z/2) + 0.5)."""
    H = HIDDEN_SIZE
    d = w_t.shape[0]
    out = jnp.zeros((d, G_PAD), jnp.float32)
    for k in range(4):
        s = 1.0 if k == 2 else 0.5
        out = out.at[:, k * GP:k * GP + H].set(s * w_t[:, k * H:(k + 1) * H])
    return out


def init_params(key):
    """Deterministic parameter init matching the PyTorch module's shapes."""
    k = 1.0 / (HIDDEN_SIZE ** 0.5)
    keys = jax.random.split(key, 10)

    def u(kk, shape):
        return jax.random.uniform(kk, shape, jnp.float32, -k, k)

    w_ih0 = u(keys[0], (4 * HIDDEN_SIZE, INPUT_SIZE))
    w_hh0 = u(keys[1], (4 * HIDDEN_SIZE, HIDDEN_SIZE))
    b_ih0 = u(keys[2], (4 * HIDDEN_SIZE,))
    b_hh0 = u(keys[3], (4 * HIDDEN_SIZE,))
    w_ih1 = u(keys[4], (4 * HIDDEN_SIZE, HIDDEN_SIZE))
    w_hh1 = u(keys[5], (4 * HIDDEN_SIZE, HIDDEN_SIZE))
    b_ih1 = u(keys[6], (4 * HIDDEN_SIZE,))
    b_hh1 = u(keys[7], (4 * HIDDEN_SIZE,))
    fc_w = u(keys[8], (1, HIDDEN_SIZE))
    fc_b = u(keys[9], (1,))
    return (w_ih0, w_hh0, b_ih0, b_hh0,
            w_ih1, w_hh1, b_ih1, b_hh1,
            fc_w, fc_b)


def simple_lstm_forward(x, params, *, batch_block=None):
    """x: (B, input_size, T) exactly as the PyTorch module receives it. Returns (B,)."""
    B, I, T = x.shape
    H = HIDDEN_SIZE
    (w_ih0, w_hh0, b_ih0, b_hh0,
     w_ih1, w_hh1, b_ih1, b_hh1,
     fc_w, fc_b) = [jnp.asarray(p, jnp.float32) for p in params]

    # Batch block TB: always a multiple of 8 (sublane-aligned per-timestep slices).
    # nb == 1 is best on single-TC chips (v5e/v6e); on v7x size batch_block so nb == 2
    # once B is large (one grid step per TensorCore) — each extra grid step replays the
    # full 16-cell serial chain plus per-step overhead.
    if batch_block is None:
        TB = min(_round_up(B, 8), 32)
    else:
        TB = _round_up(min(batch_block, _round_up(B, 8)), 8)
    nb = pl.cdiv(B, TB)
    Bp = nb * TB

    x32 = x.astype(jnp.float32)
    if Bp != B:
        x32 = jnp.pad(x32, ((0, Bp - B), (0, 0), (0, 0)))

    # Wrapper-side layout plumbing only: (B, I, T) -> per-batch-block time-major slabs
    # (nb, T*TB, I); row index inside a slab = t*TB + b.
    x_tm = jnp.transpose(x32, (2, 0, 1)).reshape(T, nb, TB, I)
    x_blk = jnp.transpose(x_tm, (1, 0, 2, 3)).reshape(nb, T * TB, I)

    # Gate-padded, pre-scaled weights (one-time wrapper prep).
    w_ih0_p = _pack_gate_cols(jnp.transpose(w_ih0))           # (I, 128)

    slab = jnp.zeros((SLAB_ROWS, G_PAD), jnp.float32)
    slab = slab.at[0:3].set(_pack_gate_cols(jnp.transpose(w_hh0)))
    slab = slab.at[3:4].set(_pack_gate_cols((b_ih0 + b_hh0).reshape(1, 4 * H)))
    slab = slab.at[4:7].set(_pack_gate_cols(jnp.transpose(w_ih1)))
    slab = slab.at[7:10].set(_pack_gate_cols(jnp.transpose(w_hh1)))
    slab = slab.at[10:11].set(_pack_gate_cols((b_ih1 + b_hh1).reshape(1, 4 * H)))
    slab = slab.at[11:12].set(jnp.full((1, G_PAD), fc_b[0], jnp.float32))
    slab = slab.at[16, 0:H].set(fc_w.reshape(-1))

    in_specs = [
        pl.BlockSpec((1, T * TB, I), lambda i: (i, 0, 0)),    # x: blocked on batch
        pl.BlockSpec((I, G_PAD), lambda i: (0, 0)),           # W_ih0 (lane-dense)
        pl.BlockSpec((SLAB_ROWS, G_PAD), lambda i: (0, 0)),   # packed small params
    ]
    out_specs = pl.BlockSpec((1, 1, TB), lambda i: (i, 0, 0))  # lane-dense output row

    # Advisory cost hint: tiny, latency-bound custom call.
    flops = (2 * T * Bp * I * G_PAD           # hoisted layer-0 projection
             + 2 * T * Bp * 3 * H * G_PAD     # 9 broadcast-FMAs per timestep
             + 2 * Bp * 8 * GP)               # final FC
    transcendentals = T * NUM_LAYERS * Bp * (G_PAD + GP)
    bytes_accessed = 4 * (int(x_blk.size) + int(w_ih0_p.size) + int(slab.size) + Bp)

    out = pl.pallas_call(
        _lstm_fc_kernel,
        out_shape=jax.ShapeDtypeStruct((nb, 1, TB), jnp.float32),
        grid=(nb,),
        in_specs=in_specs,
        out_specs=out_specs,
        compiler_params=pltpu.CompilerParams(
            dimension_semantics=("parallel",)),
        cost_estimate=pl.CostEstimate(
            flops=int(flops),
            transcendentals=int(transcendentals),
            bytes_accessed=int(bytes_accessed)),
    )(x_blk, w_ih0_p, slab)
    # TODO(synk): for non-toy batches, flip the recurrence to a batch-on-lanes layout
    # ((gates, TB) with batch on the 128-lane axis) so vreg pressure stays O(1) in TB
    # and the per-column lane-broadcasts disappear from the serial chain.
    return out.reshape(Bp)[:B]                                 # (B,)


def simple_lstm_reference(x, params):
    """Pure-JAX reference of the PyTorch forward for validation."""
    (w_ih0, w_hh0, b_ih0, b_hh0,
     w_ih1, w_hh1, b_ih1, b_hh1,
     fc_w, fc_b) = params
    H = HIDDEN_SIZE
    xt = jnp.transpose(x, (0, 2, 1)).astype(jnp.float32)      # (B, T, I)
    B, T, _ = xt.shape

    def cell(x_t, h, c, w_ih, w_hh, b_ih, b_hh):
        g = x_t @ w_ih.T + b_ih + h @ w_hh.T + b_hh
        i = jax.nn.sigmoid(g[:, 0 * H:1 * H])
        f = jax.nn.sigmoid(g[:, 1 * H:2 * H])
        gg = jnp.tanh(g[:, 2 * H:3 * H])
        o = jax.nn.sigmoid(g[:, 3 * H:4 * H])
        c = f * c + i * gg
        h = o * jnp.tanh(c)
        return h, c

    h0 = c0 = h1 = c1 = jnp.zeros((B, H), jnp.float32)
    for t in range(T):
        x_t = xt[:, t, :]
        h0, c0 = cell(x_t, h0, c0, w_ih0, w_hh0, b_ih0, b_hh0)
        h1, c1 = cell(h0, h1, c1, w_ih1, w_hh1, b_ih1, b_hh1)
    return (h1 @ fc_w.T + fc_b).reshape(-1)


if __name__ == "__main__":
    key = jax.random.PRNGKey(0)
    k_x, k_p = jax.random.split(key)

    BATCH, SEQ = 2, 8
    x = jax.random.normal(k_x, (BATCH, INPUT_SIZE, SEQ), jnp.float32)  # (B, C=40, L=8)
    params = init_params(k_p)

    out = simple_lstm_forward(x, params)
    out = jax.block_until_ready(out)

    ref = simple_lstm_reference(x, params)
    assert out.shape == (BATCH,)
    assert jnp.allclose(out, ref, atol=2e-5, rtol=2e-5), (out, ref)

    print("KERNEL_OK")
</pallas_src>

<mosaic_0001>
module attributes {stable_mosaic.version = 11 : i64} {
  func.func @_lstm_fc_kernel(%arg0: i32, %arg1: memref<1x64x40xf32, #tpu.memory_space<vmem>>, %arg2: memref<40x128xf32, #tpu.memory_space<vmem>>, %arg3: memref<24x128xf32, #tpu.memory_space<vmem>>, %arg4: memref<1x1x8xf32, #tpu.memory_space<vmem>>) attributes {dimension_semantics = [#tpu.dimension_semantics<parallel>], iteration_bounds = array<i64: 1>, scalar_prefetch = 0 : i64, scratch_operands = 0 : i64, tpu.core_type = #tpu.core_type<tc>, window_params = [{transform_indices = @transform_0, window_bounds = array<i64: 1, 64, 40>}, {pipeline_mode = #tpu.pipeline_mode<synchronous>, transform_indices = @transform_1, window_bounds = array<i64: 40, 128>}, {pipeline_mode = #tpu.pipeline_mode<synchronous>, transform_indices = @transform_2, window_bounds = array<i64: 24, 128>}, {transform_indices = @transform_3, window_bounds = array<i64: 1, 1, 8>}]} {
    %c0 = arith.constant 0 : index
    %c0_0 = arith.constant 0 : index
    %0 = vector.load %arg3[%c0, %c0_0] : memref<24x128xf32, #tpu.memory_space<vmem>>, vector<24x128xf32>
    %c0_1 = arith.constant 0 : index
    %c0_2 = arith.constant 0 : index
    %c0_3 = arith.constant 0 : index
    %1 = vector.load %arg1[%c0_1, %c0_2, %c0_3] : memref<1x64x40xf32, #tpu.memory_space<vmem>>, vector<1x64x40xf32>
    %2 = vector.shape_cast %1 : vector<1x64x40xf32> to vector<64x40xf32>
    %c0_4 = arith.constant 0 : index
    %c0_5 = arith.constant 0 : index
    %3 = vector.load %arg2[%c0_4, %c0_5] : memref<40x128xf32, #tpu.memory_space<vmem>>, vector<40x128xf32>
    %cst = arith.constant dense<0.000000e+00> : vector<64x128xf32>
    %4 = tpu.matmul %2, %3, %cst {dimension_numbers = #tpu.dot_dimension_numbers<[1], [0], [0], [1], [0, 0, 1, 1], [], []>} : vector<64x40xf32>, vector<40x128xf32>, vector<64x128xf32> -> vector<64x128xf32>
    %5 = vector.extract_strided_slice %0 {offsets = [3, 0], sizes = [1, 128], strides = [1, 1]} : vector<24x128xf32> to vector<1x128xf32>
    %6 = vector.broadcast %5 : vector<1x128xf32> to vector<64x128xf32>
    %7 = arith.addf %4, %6 : vector<64x128xf32>
    %8 = vector.extract_strided_slice %0 {offsets = [0, 0], sizes = [1, 128], strides = [1, 1]} : vector<24x128xf32> to vector<1x128xf32>
    %9 = vector.extract_strided_slice %0 {offsets = [1, 0], sizes = [1, 128], strides = [1, 1]} : vector<24x128xf32> to vector<1x128xf32>
    %10 = vector.extract_strided_slice %0 {offsets = [2, 0], sizes = [1, 128], strides = [1, 1]} : vector<24x128xf32> to vector<1x128xf32>
    %11 = vector.extract_strided_slice %0 {offsets = [4, 0], sizes = [1, 128], strides = [1, 1]} : vector<24x128xf32> to vector<1x128xf32>
    %12 = vector.extract_strided_slice %0 {offsets = [5, 0], sizes = [1, 128], strides = [1, 1]} : vector<24x128xf32> to vector<1x128xf32>
    %13 = vector.extract_strided_slice %0 {offsets = [6, 0], sizes = [1, 128], strides = [1, 1]} : vector<24x128xf32> to vector<1x128xf32>
    %14 = vector.extract_strided_slice %0 {offsets = [7, 0], sizes = [1, 128], strides = [1, 1]} : vector<24x128xf32> to vector<1x128xf32>
    %15 = vector.extract_strided_slice %0 {offsets = [8, 0], sizes = [1, 128], strides = [1, 1]} : vector<24x128xf32> to vector<1x128xf32>
    %16 = vector.extract_strided_slice %0 {offsets = [9, 0], sizes = [1, 128], strides = [1, 1]} : vector<24x128xf32> to vector<1x128xf32>
    %17 = vector.extract_strided_slice %0 {offsets = [10, 0], sizes = [1, 128], strides = [1, 1]} : vector<24x128xf32> to vector<1x128xf32>
    %18 = vector.shape_cast %17 : vector<1x128xf32> to vector<1x128xf32>
    %19 = vector.broadcast %18 : vector<1x128xf32> to vector<8x128xf32>
    %cst_6 = arith.constant 0.000000e+00 : f32
    %20 = vector.broadcast %cst_6 : f32 to vector<8x32xf32>
    %21 = vector.extract_strided_slice %7 {offsets = [0, 0], sizes = [8, 128], strides = [1, 1]} : vector<64x128xf32> to vector<8x128xf32>
    %22 = vector.extract_strided_slice %20 {offsets = [0, 0], sizes = [8, 1], strides = [1, 1]} : vector<8x32xf32> to vector<8x1xf32>
    %23 = vector.broadcast %22 : vector<8x1xf32> to vector<8x128xf32>
    %24 = vector.broadcast %8 : vector<1x128xf32> to vector<8x128xf32>
    %25 = arith.mulf %23, %24 : vector<8x128xf32>
    %26 = arith.addf %21, %25 : vector<8x128xf32>
    %27 = vector.extract_strided_slice %20 {offsets = [0, 1], sizes = [8, 1], strides = [1, 1]} : vector<8x32xf32> to vector<8x1xf32>
    %28 = vector.broadcast %27 : vector<8x1xf32> to vector<8x128xf32>
    %29 = vector.broadcast %9 : vector<1x128xf32> to vector<8x128xf32>
    %30 = arith.mulf %28, %29 : vector<8x128xf32>
    %31 = arith.addf %26, %30 : vector<8x128xf32>
    %32 = vector.extract_strided_slice %20 {offsets = [0, 2], sizes = [8, 1], strides = [1, 1]} : vector<8x32xf32> to vector<8x1xf32>
    %33 = vector.broadcast %32 : vector<8x1xf32> to vector<8x128xf32>
    %34 = vector.broadcast %10 : vector<1x128xf32> to vector<8x128xf32>
    %35 = arith.mulf %33, %34 : vector<8x128xf32>
    %36 = arith.addf %31, %35 : vector<8x128xf32>
    %37 = math.tanh %36 : vector<8x128xf32>
    %38 = vector.extract_strided_slice %37 {offsets = [0, 0], sizes = [8, 32], strides = [1, 1]} : vector<8x128xf32> to vector<8x32xf32>
    %cst_7 = arith.constant 5.000000e-01 : f32
    %39 = vector.broadcast %cst_7 : f32 to vector<8x32xf32>
    %40 = arith.mulf %39, %38 : vector<8x32xf32>
    %cst_8 = arith.constant 5.000000e-01 : f32
    %41 = vector.broadcast %cst_8 : f32 to vector<8x32xf32>
    %42 = arith.addf %40, %41 : vector<8x32xf32>
    %43 = vector.extract_strided_slice %37 {offsets = [0, 32], sizes = [8, 32], strides = [1, 1]} : vector<8x128xf32> to vector<8x32xf32>
    %cst_9 = arith.constant 5.000000e-01 : f32
    %44 = vector.broadcast %cst_9 : f32 to vector<8x32xf32>
    %45 = arith.mulf %44, %43 : vector<8x32xf32>
    %cst_10 = arith.constant 5.000000e-01 : f32
    %46 = vector.broadcast %cst_10 : f32 to vector<8x32xf32>
    %47 = arith.addf %45, %46 : vector<8x32xf32>
    %48 = vector.extract_strided_slice %37 {offsets = [0, 64], sizes = [8, 32], strides = [1, 1]} : vector<8x128xf32> to vector<8x32xf32>
    %49 = vector.extract_strided_slice %37 {offsets = [0, 96], sizes = [8, 32], strides = [1, 1]} : vector<8x128xf32> to vector<8x32xf32>
    %cst_11 = arith.constant 5.000000e-01 : f32
    %50 = vector.broadcast %cst_11 : f32 to vector<8x32xf32>
    %51 = arith.mulf %50, %49 : vector<8x32xf32>
    %cst_12 = arith.constant 5.000000e-01 : f32
    %52 = vector.broadcast %cst_12 : f32 to vector<8x32xf32>
    %53 = arith.addf %51, %52 : vector<8x32xf32>
    %54 = arith.mulf %47, %20 : vector<8x32xf32>
    %55 = arith.mulf %42, %48 : vector<8x32xf32>
    %56 = arith.addf %54, %55 : vector<8x32xf32>
    %57 = math.tanh %56 : vector<8x32xf32>
    %58 = arith.mulf %53, %57 : vector<8x32xf32>
    %59 = vector.extract_strided_slice %58 {offsets = [0, 0], sizes = [8, 1], strides = [1, 1]} : vector<8x32xf32> to vector<8x1xf32>
    %60 = vector.broadcast %59 : vector<8x1xf32> to vector<8x128xf32>
    %61 = vector.broadcast %11 : vector<1x128xf32> to vector<8x128xf32>
    %62 = arith.mulf %60, %61 : vector<8x128xf32>
    %63 = arith.addf %19, %62 : vector<8x128xf32>
    %64 = vector.extract_strided_slice %58 {offsets = [0, 1], sizes = [8, 1], strides = [1, 1]} : vector<8x32xf32> to vector<8x1xf32>
    %65 = vector.broadcast %64 : vector<8x1xf32> to vector<8x128xf32>
    %66 = vector.broadcast %12 : vector<1x128xf32> to vector<8x128xf32>
    %67 = arith.mulf %65, %66 : vector<8x128xf32>
    %68 = arith.addf %63, %67 : vector<8x128xf32>
    %69 = vector.extract_strided_slice %58 {offsets = [0, 2], sizes = [8, 1], strides = [1, 1]} : vector<8x32xf32> to vector<8x1xf32>
    %70 = vector.broadcast %69 : vector<8x1xf32> to vector<8x128xf32>
    %71 = vector.broadcast %13 : vector<1x128xf32> to vector<8x128xf32>
    %72 = arith.mulf %70, %71 : vector<8x128xf32>
    %73 = arith.addf %68, %72 : vector<8x128xf32>
    %74 = vector.extract_strided_slice %20 {offsets = [0, 0], sizes = [8, 1], strides = [1, 1]} : vector<8x32xf32> to vector<8x1xf32>
    %75 = vector.broadcast %74 : vector<8x1xf32> to vector<8x128xf32>
    %76 = vector.broadcast %14 : vector<1x128xf32> to vector<8x128xf32>
    %77 = arith.mulf %75, %76 : vector<8x128xf32>
    %78 = arith.addf %73, %77 : vector<8x128xf32>
    %79 = vector.extract_strided_slice %20 {offsets = [0, 1], sizes = [8, 1], strides = [1, 1]} : vector<8x32xf32> to vector<8x1xf32>
    %80 = vector.broadcast %79 : vector<8x1xf32> to vector<8x128xf32>
    %81 = vector.broadcast %15 : vector<1x128xf32> to vector<8x128xf32>
    %82 = arith.mulf %80, %81 : vector<8x128xf32>
    %83 = arith.addf %78, %82 : vector<8x128xf32>
    %84 = vector.extract_strided_slice %20 {offsets = [0, 2], sizes = [8, 1], strides = [1, 1]} : vector<8x32xf32> to vector<8x1xf32>
    %85 = vector.broadcast %84 : vector<8x1xf32> to vector<8x128xf32>
    %86 = vector.broadcast %16 : vector<1x128xf32> to vector<8x128xf32>
    %87 = arith.mulf %85, %86 : vector<8x128xf32>
    %88 = arith.addf %83, %87 : vector<8x128xf32>
    %89 = math.tanh %88 : vector<8x128xf32>
    %90 = vector.extract_strided_slice %89 {offsets = [0, 0], sizes = [8, 32], strides = [1, 1]} : vector<8x128xf32> to vector<8x32xf32>
    %cst_13 = arith.constant 5.000000e-01 : f32
    %91 = vector.broadcast %cst_13 : f32 to vector<8x32xf32>
    %92 = arith.mulf %91, %90 : vector<8x32xf32>
    %cst_14 = arith.constant 5.000000e-01 : f32
    %93 = vector.broadcast %cst_14 : f32 to vector<8x32xf32>
    %94 = arith.addf %92, %93 : vector<8x32xf32>
    %95 = vector.extract_strided_slice %89 {offsets = [0, 32], sizes = [8, 32], strides = [1, 1]} : vector<8x128xf32> to vector<8x32xf32>
    %cst_15 = arith.constant 5.000000e-01 : f32
    %96 = vector.broadcast %cst_15 : f32 to vector<8x32xf32>
    %97 = arith.mulf %96, %95 : vector<8x32xf32>
    %cst_16 = arith.constant 5.000000e-01 : f32
    %98 = vector.broadcast %cst_16 : f32 to vector<8x32xf32>
    %99 = arith.addf %97, %98 : vector<8x32xf32>
    %100 = vector.extract_strided_slice %89 {offsets = [0, 64], sizes = [8, 32], strides = [1, 1]} : vector<8x128xf32> to vector<8x32xf32>
    %101 = vector.extract_strided_slice %89 {offsets = [0, 96], sizes = [8, 32], strides = [1, 1]} : vector<8x128xf32> to vector<8x32xf32>
    %cst_17 = arith.constant 5.000000e-01 : f32
    %102 = vector.broadcast %cst_17 : f32 to vector<8x32xf32>
    %103 = arith.mulf %102, %101 : vector<8x32xf32>
    %cst_18 = arith.constant 5.000000e-01 : f32
    %104 = vector.broadcast %cst_18 : f32 to vector<8x32xf32>
    %105 = arith.addf %103, %104 : vector<8x32xf32>
    %106 = arith.mulf %99, %20 : vector<8x32xf32>
    %107 = arith.mulf %94, %100 : vector<8x32xf32>
    %108 = arith.addf %106, %107 : vector<8x32xf32>
    %109 = math.tanh %108 : vector<8x32xf32>
    %110 = arith.mulf %105, %109 : vector<8x32xf32>
    %111 = vector.extract_strided_slice %7 {offsets = [8, 0], sizes = [8, 128], strides = [1, 1]} : vector<64x128xf32> to vector<8x128xf32>
    %112 = vector.extract_strided_slice %58 {offsets = [0, 0], sizes = [8, 1], strides = [1, 1]} : vector<8x32xf32> to vector<8x1xf32>
    %113 = vector.broadcast %112 : vector<8x1xf32> to vector<8x128xf32>
    %114 = vector.broadcast %8 : vector<1x128xf32> to vector<8x128xf32>
    %115 = arith.mulf %113, %114 : vector<8x128xf32>
    %116 = arith.addf %111, %115 : vector<8x128xf32>
    %117 = vector.extract_strided_slice %58 {offsets = [0, 1], sizes = [8, 1], strides = [1, 1]} : vector<8x32xf32> to vector<8x1xf32>
    %118 = vector.broadcast %117 : vector<8x1xf32> to vector<8x128xf32>
    %119 = vector.broadcast %9 : vector<1x128xf32> to vector<8x128xf32>
    %120 = arith.mulf %118, %119 : vector<8x128xf32>
    %121 = arith.addf %116, %120 : vector<8x128xf32>
    %122 = vector.extract_strided_slice %58 {offsets = [0, 2], sizes = [8, 1], strides = [1, 1]} : vector<8x32xf32> to vector<8x1xf32>
    %123 = vector.broadcast %122 : vector<8x1xf32> to vector<8x128xf32>
    %124 = vector.broadcast %10 : vector<1x128xf32> to vector<8x128xf32>
    %125 = arith.mulf %123, %124 : vector<8x128xf32>
    %126 = arith.addf %121, %125 : vector<8x128xf32>
    %127 = math.tanh %126 : vector<8x128xf32>
    %128 = vector.extract_strided_slice %127 {offsets = [0, 0], sizes = [8, 32], strides = [1, 1]} : vector<8x128xf32> to vector<8x32xf32>
    %cst_19 = arith.constant 5.000000e-01 : f32
    %129 = vector.broadcast %cst_19 : f32 to vector<8x32xf32>
    %130 = arith.mulf %129, %128 : vector<8x32xf32>
    %cst_20 = arith.constant 5.000000e-01 : f32
    %131 = vector.broadcast %cst_20 : f32 to vector<8x32xf32>
    %132 = arith.addf %130, %131 : vector<8x32xf32>
    %133 = vector.extract_strided_slice %127 {offsets = [0, 32], sizes = [8, 32], strides = [1, 1]} : vector<8x128xf32> to vector<8x32xf32>
    %cst_21 = arith.constant 5.000000e-01 : f32
    %134 = vector.broadcast %cst_21 : f32 to vector<8x32xf32>
    %135 = arith.mulf %134, %133 : vector<8x32xf32>
    %cst_22 = arith.constant 5.000000e-01 : f32
    %136 = vector.broadcast %cst_22 : f32 to vector<8x32xf32>
    %137 = arith.addf %135, %136 : vector<8x32xf32>
    %138 = vector.extract_strided_slice %127 {offsets = [0, 64], sizes = [8, 32], strides = [1, 1]} : vector<8x128xf32> to vector<8x32xf32>
    %139 = vector.extract_strided_slice %127 {offsets = [0, 96], sizes = [8, 32], strides = [1, 1]} : vector<8x128xf32> to vector<8x32xf32>
    %cst_23 = arith.constant 5.000000e-01 : f32
    %140 = vector.broadcast %cst_23 : f32 to vector<8x32xf32>
    %141 = arith.mulf %140, %139 : vector<8x32xf32>
    %cst_24 = arith.constant 5.000000e-01 : f32
    %142 = vector.broadcast %cst_24 : f32 to vector<8x32xf32>
    %143 = arith.addf %141, %142 : vector<8x32xf32>
    %144 = arith.mulf %137, %56 : vector<8x32xf32>
    %145 = arith.mulf %132, %138 : vector<8x32xf32>
    %146 = arith.addf %144, %145 : vector<8x32xf32>
    %147 = math.tanh %146 : vector<8x32xf32>
    %148 = arith.mulf %143, %147 : vector<8x32xf32>
    %149 = vector.extract_strided_slice %148 {offsets = [0, 0], sizes = [8, 1], strides = [1, 1]} : vector<8x32xf32> to vector<8x1xf32>
    %150 = vector.broadcast %149 : vector<8x1xf32> to vector<8x128xf32>
    %151 = vector.broadcast %11 : vector<1x128xf32> to vector<8x128xf32>
    %152 = arith.mulf %150, %151 : vector<8x128xf32>
    %153 = arith.addf %19, %152 : vector<8x128xf32>
    %154 = vector.extract_strided_slice %148 {offsets = [0, 1], sizes = [8, 1], strides = [1, 1]} : vector<8x32xf32> to vector<8x1xf32>
    %155 = vector.broadcast %154 : vector<8x1xf32> to vector<8x128xf32>
    %156 = vector.broadcast %12 : vector<1x128xf32> to vector<8x128xf32>
    %157 = arith.mulf %155, %156 : vector<8x128xf32>
    %158 = arith.addf %153, %157 : vector<8x128xf32>
    %159 = vector.extract_strided_slice %148 {offsets = [0, 2], sizes = [8, 1], strides = [1, 1]} : vector<8x32xf32> to vector<8x1xf32>
    %160 = vector.broadcast %159 : vector<8x1xf32> to vector<8x128xf32>
    %161 = vector.broadcast %13 : vector<1x128xf32> to vector<8x128xf32>
    %162 = arith.mulf %160, %161 : vector<8x128xf32>
    %163 = arith.addf %158, %162 : vector<8x128xf32>
    %164 = vector.extract_strided_slice %110 {offsets = [0, 0], sizes = [8, 1], strides = [1, 1]} : vector<8x32xf32> to vector<8x1xf32>
    %165 = vector.broadcast %164 : vector<8x1xf32> to vector<8x128xf32>
    %166 = vector.broadcast %14 : vector<1x128xf32> to vector<8x128xf32>
    %167 = arith.mulf %165, %166 : vector<8x128xf32>
    %168 = arith.addf %163, %167 : vector<8x128xf32>
    %169 = vector.extract_strided_slice %110 {offsets = [0, 1], sizes = [8, 1], strides = [1, 1]} : vector<8x32xf32> to vector<8x1xf32>
    %170 = vector.broadcast %169 : vector<8x1xf32> to vector<8x128xf32>
    %171 = vector.broadcast %15 : vector<1x128xf32> to vector<8x128xf32>
    %172 = arith.mulf %170, %171 : vector<8x128xf32>
    %173 = arith.addf %168, %172 : vector<8x128xf32>
    %174 = vector.extract_strided_slice %110 {offsets = [0, 2], sizes = [8, 1], strides = [1, 1]} : vector<8x32xf32> to vector<8x1xf32>
    %175 = vector.broadcast %174 : vector<8x1xf32> to vector<8x128xf32>
    %176 = vector.broadcast %16 : vector<1x128xf32> to vector<8x128xf32>
    %177 = arith.mulf %175, %176 : vector<8x128xf32>
    %178 = arith.addf %173, %177 : vector<8x128xf32>
    %179 = math.tanh %178 : vector<8x128xf32>
    %180 = vector.extract_strided_slice %179 {offsets = [0, 0], sizes = [8, 32], strides = [1, 1]} : vector<8x128xf32> to vector<8x32xf32>
    %cst_25 = arith.constant 5.000000e-01 : f32
    %181 = vector.broadcast %cst_25 : f32 to vector<8x32xf32>
    %182 = arith.mulf %181, %180 : vector<8x32xf32>
    %cst_26 = arith.constant 5.000000e-01 : f32
    %183 = vector.broadcast %cst_26 : f32 to vector<8x32xf32>
    %184 = arith.addf %182, %183 : vector<8x32xf32>
    %185 = vector.extract_strided_slice %179 {offsets = [0, 32], sizes = [8, 32], strides = [1, 1]} : vector<8x128xf32> to vector<8x32xf32>
    %cst_27 = arith.constant 5.000000e-01 : f32
    %186 = vector.broadcast %cst_27 : f32 to vector<8x32xf32>
    %187 = arith.mulf %186, %185 : vector<8x32xf32>
    %cst_28 = arith.constant 5.000000e-01 : f32
    %188 = vector.broadcast %cst_28 : f32 to vector<8x32xf32>
    %189 = arith.addf %187, %188 : vector<8x32xf32>
    %190 = vector.extract_strided_slice %179 {offsets = [0, 64], sizes = [8, 32], strides = [1, 1]} : vector<8x128xf32> to vector<8x32xf32>
    %191 = vector.extract_strided_slice %179 {offsets = [0, 96], sizes = [8, 32], strides = [1, 1]} : vector<8x128xf32> to vector<8x32xf32>
    %cst_29 = arith.constant 5.000000e-01 : f32
    %192 = vector.broadcast %cst_29 : f32 to vector<8x32xf32>
    %193 = arith.mulf %192, %191 : vector<8x32xf32>
    %cst_30 = arith.constant 5.000000e-01 : f32
    %194 = vector.broadcast %cst_30 : f32 to vector<8x32xf32>
    %195 = arith.addf %193, %194 : vector<8x32xf32>
    %196 = arith.mulf %189, %108 : vector<8x32xf32>
    %197 = arith.mulf %184, %190 : vector<8x32xf32>
    %198 = arith.addf %196, %197 : vector<8x32xf32>
    %199 = math.tanh %198 : vector<8x32xf32>
    %200 = arith.mulf %195, %199 : vector<8x32xf32>
    %201 = vector.extract_strided_slice %7 {offsets = [16, 0], sizes = [8, 128], strides = [1, 1]} : vector<64x128xf32> to vector<8x128xf32>
    %202 = vector.extract_strided_slice %148 {offsets = [0, 0], sizes = [8, 1], strides = [1, 1]} : vector<8x32xf32> to vector<8x1xf32>
    %203 = vector.broadcast %202 : vector<8x1xf32> to vector<8x128xf32>
    %204 = vector.broadcast %8 : vector<1x128xf32> to vector<8x128xf32>
    %205 = arith.mulf %203, %204 : vector<8x128xf32>
    %206 = arith.addf %201, %205 : vector<8x128xf32>
    %207 = vector.extract_strided_slice %148 {offsets = [0, 1], sizes = [8, 1], strides = [1, 1]} : vector<8x32xf32> to vector<8x1xf32>
    %208 = vector.broadcast %207 : vector<8x1xf32> to vector<8x128xf32>
    %209 = vector.broadcast %9 : vector<1x128xf32> to vector<8x128xf32>
    %210 = arith.mulf %208, %209 : vector<8x128xf32>
    %211 = arith.addf %206, %210 : vector<8x128xf32>
    %212 = vector.extract_strided_slice %148 {offsets = [0, 2], sizes = [8, 1], strides = [1, 1]} : vector<8x32xf32> to vector<8x1xf32>
    %213 = vector.broadcast %212 : vector<8x1xf32> to vector<8x128xf32>
    %214 = vector.broadcast %10 : vector<1x128xf32> to vector<8x128xf32>
    %215 = arith.mulf %213, %214 : vector<8x128xf32>
    %216 = arith.addf %211, %215 : vector<8x128xf32>
    %217 = math.tanh %216 : vector<8x128xf32>
    %218 = vector.extract_strided_slice %217 {offsets = [0, 0], sizes = [8, 32], strides = [1, 1]} : vector<8x128xf32> to vector<8x32xf32>
    %cst_31 = arith.constant 5.000000e-01 : f32
    %219 = vector.broadcast %cst_31 : f32 to vector<8x32xf32>
    %220 = arith.mulf %219, %218 : vector<8x32xf32>
    %cst_32 = arith.constant 5.000000e-01 : f32
    %221 = vector.broadcast %cst_32 : f32 to vector<8x32xf32>
    %222 = arith.addf %220, %221 : vector<8x32xf32>
    %223 = vector.extract_strided_slice %217 {offsets = [0, 32], sizes = [8, 32], strides = [1, 1]} : vector<8x128xf32> to vector<8x32xf32>
    %cst_33 = arith.constant 5.000000e-01 : f32
    %224 = vector.broadcast %cst_33 : f32 to vector<8x32xf32>
    %225 = arith.mulf %224, %223 : vector<8x32xf32>
    %cst_34 = arith.constant 5.000000e-01 : f32
    %226 = vector.broadcast %cst_34 : f32 to vector<8x32xf32>
    %227 = arith.addf %225, %226 : vector<8x32xf32>
    %228 = vector.extract_strided_slice %217 {offsets = [0, 64], sizes = [8, 32], strides = [1, 1]} : vector<8x128xf32> to vector<8x32xf32>
    %229 = vector.extract_strided_slice %217 {offsets = [0, 96], sizes = [8, 32], strides = [1, 1]} : vector<8x128xf32> to vector<8x32xf32>
    %cst_35 = arith.constant 5.000000e-01 : f32
    %230 = vector.broadcast %cst_35 : f32 to vector<8x32xf32>
    %231 = arith.mulf %230, %229 : vector<8x32xf32>
    %cst_36 = arith.constant 5.000000e-01 : f32
    %232 = vector.broadcast %cst_36 : f32 to vector<8x32xf32>
    %233 = arith.addf %231, %232 : vector<8x32xf32>
    %234 = arith.mulf %227, %146 : vector<8x32xf32>
    %235 = arith.mulf %222, %228 : vector<8x32xf32>
    %236 = arith.addf %234, %235 : vector<8x32xf32>
    %237 = math.tanh %236 : vector<8x32xf32>
    %238 = arith.mulf %233, %237 : vector<8x32xf32>
    %239 = vector.extract_strided_slice %238 {offsets = [0, 0], sizes = [8, 1], strides = [1, 1]} : vector<8x32xf32> to vector<8x1xf32>
    %240 = vector.broadcast %239 : vector<8x1xf32> to vector<8x128xf32>
    %241 = vector.broadcast %11 : vector<1x128xf32> to vector<8x128xf32>
    %242 = arith.mulf %240, %241 : vector<8x128xf32>
    %243 = arith.addf %19, %242 : vector<8x128xf32>
    %244 = vector.extract_strided_slice %238 {offsets = [0, 1], sizes = [8, 1], strides = [1, 1]} : vector<8x32xf32> to vector<8x1xf32>
    %245 = vector.broadcast %244 : vector<8x1xf32> to vector<8x128xf32>
    %246 = vector.broadcast %12 : vector<1x128xf32> to vector<8x128xf32>
    %247 = arith.mulf %245, %246 : vector<8x128xf32>
    %248 = arith.addf %243, %247 : vector<8x128xf32>
    %249 = vector.extract_strided_slice %238 {offsets = [0, 2], sizes = [8, 1], strides = [1, 1]} : vector<8x32xf32> to vector<8x1xf32>
    %250 = vector.broadcast %249 : vector<8x1xf32> to vector<8x128xf32>
    %251 = vector.broadcast %13 : vector<1x128xf32> to vector<8x128xf32>
    %252 = arith.mulf %250, %251 : vector<8x128xf32>
    %253 = arith.addf %248, %252 : vector<8x128xf32>
    %254 = vector.extract_strided_slice %200 {offsets = [0, 0], sizes = [8, 1], strides = [1, 1]} : vector<8x32xf32> to vector<8x1xf32>
    %255 = vector.broadcast %254 : vector<8x1xf32> to vector<8x128xf32>
    %256 = vector.broadcast %14 : vector<1x128xf32> to vector<8x128xf32>
    %257 = arith.mulf %255, %256 : vector<8x128xf32>
    %258 = arith.addf %253, %257 : vector<8x128xf32>
    %259 = vector.extract_strided_slice %200 {offsets = [0, 1], sizes = [8, 1], strides = [1, 1]} : vector<8x32xf32> to vector<8x1xf32>
    %260 = vector.broadcast %259 : vector<8x1xf32> to vector<8x128xf32>
    %261 = vector.broadcast %15 : vector<1x128xf32> to vector<8x128xf32>
    %262 = arith.mulf %260, %261 : vector<8x128xf32>
    %263 = arith.addf %258, %262 : vector<8x128xf32>
    %264 = vector.extract_strided_slice %200 {offsets = [0, 2], sizes = [8, 1], strides = [1, 1]} : vector<8x32xf32> to vector<8x1xf32>
    %265 = vector.broadcast %264 : vector<8x1xf32> to vector<8x128xf32>
    %266 = vector.broadcast %16 : vector<1x128xf32> to vector<8x128xf32>
    %267 = arith.mulf %265, %266 : vector<8x128xf32>
    %268 = arith.addf %263, %267 : vector<8x128xf32>
    %269 = math.tanh %268 : vector<8x128xf32>
    %270 = vector.extract_strided_slice %269 {offsets = [0, 0], sizes = [8, 32], strides = [1, 1]} : vector<8x128xf32> to vector<8x32xf32>
    %cst_37 = arith.constant 5.000000e-01 : f32
    %271 = vector.broadcast %cst_37 : f32 to vector<8x32xf32>
    %272 = arith.mulf %271, %270 : vector<8x32xf32>
    %cst_38 = arith.constant 5.000000e-01 : f32
    %273 = vector.broadcast %cst_38 : f32 to vector<8x32xf32>
    %274 = arith.addf %272, %273 : vector<8x32xf32>
    %275 = vector.extract_strided_slice %269 {offsets = [0, 32], sizes = [8, 32], strides = [1, 1]} : vector<8x128xf32> to vector<8x32xf32>
    %cst_39 = arith.constant 5.000000e-01 : f32
    %276 = vector.broadcast %cst_39 : f32 to vector<8x32xf32>
    %277 = arith.mulf %276, %275 : vector<8x32xf32>
    %cst_40 = arith.constant 5.000000e-01 : f32
    %278 = vector.broadcast %cst_40 : f32 to vector<8x32xf32>
    %279 = arith.addf %277, %278 : vector<8x32xf32>
    %280 = vector.extract_strided_slice %269 {offsets = [0, 64], sizes = [8, 32], strides = [1, 1]} : vector<8x128xf32> to vector<8x32xf32>
    %281 = vector.extract_strided_slice %269 {offsets = [0, 96], sizes = [8, 32], strides = [1, 1]} : vector<8x128xf32> to vector<8x32xf32>
    %cst_41 = arith.constant 5.000000e-01 : f32
    %282 = vector.broadcast %cst_41 : f32 to vector<8x32xf32>
    %283 = arith.mulf %282, %281 : vector<8x32xf32>
    %cst_42 = arith.constant 5.000000e-01 : f32
    %284 = vector.broadcast %cst_42 : f32 to vector<8x32xf32>
    %285 = arith.addf %283, %284 : vector<8x32xf32>
    %286 = arith.mulf %279, %198 : vector<8x32xf32>
    %287 = arith.mulf %274, %280 : vector<8x32xf32>
    %288 = arith.addf %286, %287 : vector<8x32xf32>
    %289 = math.tanh %288 : vector<8x32xf32>
    %290 = arith.mulf %285, %289 : vector<8x32xf32>
    %291 = vector.extract_strided_slice %7 {offsets = [24, 0], sizes = [8, 128], strides = [1, 1]} : vector<64x128xf32> to vector<8x128xf32>
    %292 = vector.extract_strided_slice %238 {offsets = [0, 0], sizes = [8, 1], strides = [1, 1]} : vector<8x32xf32> to vector<8x1xf32>
    %293 = vector.broadcast %292 : vector<8x1xf32> to vector<8x128xf32>
    %294 = vector.broadcast %8 : vector<1x128xf32> to vector<8x128xf32>
    %295 = arith.mulf %293, %294 : vector<8x128xf32>
    %296 = arith.addf %291, %295 : vector<8x128xf32>
    %297 = vector.extract_strided_slice %238 {offsets = [0, 1], sizes = [8, 1], strides = [1, 1]} : vector<8x32xf32> to vector<8x1xf32>
    %298 = vector.broadcast %297 : vector<8x1xf32> to vector<8x128xf32>
    %299 = vector.broadcast %9 : vector<1x128xf32> to vector<8x128xf32>
    %300 = arith.mulf %298, %299 : vector<8x128xf32>
    %301 = arith.addf %296, %300 : vector<8x128xf32>
    %302 = vector.extract_strided_slice %238 {offsets = [0, 2], sizes = [8, 1], strides = [1, 1]} : vector<8x32xf32> to vector<8x1xf32>
    %303 = vector.broadcast %302 : vector<8x1xf32> to vector<8x128xf32>
    %304 = vector.broadcast %10 : vector<1x128xf32> to vector<8x128xf32>
    %305 = arith.mulf %303, %304 : vector<8x128xf32>
    %306 = arith.addf %301, %305 : vector<8x128xf32>
    %307 = math.tanh %306 : vector<8x128xf32>
    %308 = vector.extract_strided_slice %307 {offsets = [0, 0], sizes = [8, 32], strides = [1, 1]} : vector<8x128xf32> to vector<8x32xf32>
    %cst_43 = arith.constant 5.000000e-01 : f32
    %309 = vector.broadcast %cst_43 : f32 to vector<8x32xf32>
    %310 = arith.mulf %309, %308 : vector<8x32xf32>
    %cst_44 = arith.constant 5.000000e-01 : f32
    %311 = vector.broadcast %cst_44 : f32 to vector<8x32xf32>
    %312 = arith.addf %310, %311 : vector<8x32xf32>
    %313 = vector.extract_strided_slice %307 {offsets = [0, 32], sizes = [8, 32], strides = [1, 1]} : vector<8x128xf32> to vector<8x32xf32>
    %cst_45 = arith.constant 5.000000e-01 : f32
    %314 = vector.broadcast %cst_45 : f32 to vector<8x32xf32>
    %315 = arith.mulf %314, %313 : vector<8x32xf32>
    %cst_46 = arith.constant 5.000000e-01 : f32
    %316 = vector.broadcast %cst_46 : f32 to vector<8x32xf32>
    %317 = arith.addf %315, %316 : vector<8x32xf32>
    %318 = vector.extract_strided_slice %307 {offsets = [0, 64], sizes = [8, 32], strides = [1, 1]} : vector<8x128xf32> to vector<8x32xf32>
    %319 = vector.extract_strided_slice %307 {offsets = [0, 96], sizes = [8, 32], strides = [1, 1]} : vector<8x128xf32> to vector<8x32xf32>
    %cst_47 = arith.constant 5.000000e-01 : f32
    %320 = vector.broadcast %cst_47 : f32 to vector<8x32xf32>
    %321 = arith.mulf %320, %319 : vector<8x32xf32>
    %cst_48 = arith.constant 5.000000e-01 : f32
    %322 = vector.broadcast %cst_48 : f32 to vector<8x32xf32>
    %323 = arith.addf %321, %322 : vector<8x32xf32>
    %324 = arith.mulf %317, %236 : vector<8x32xf32>
    %325 = arith.mulf %312, %318 : vector<8x32xf32>
    %326 = arith.addf %324, %325 : vector<8x32xf32>
    %327 = math.tanh %326 : vector<8x32xf32>
    %328 = arith.mulf %323, %327 : vector<8x32xf32>
    %329 = vector.extract_strided_slice %328 {offsets = [0, 0], sizes = [8, 1], strides = [1, 1]} : vector<8x32xf32> to vector<8x1xf32>
    %330 = vector.broadcast %329 : vector<8x1xf32> to vector<8x128xf32>
    %331 = vector.broadcast %11 : vector<1x128xf32> to vector<8x128xf32>
    %332 = arith.mulf %330, %331 : vector<8x128xf32>
    %333 = arith.addf %19, %332 : vector<8x128xf32>
    %334 = vector.extract_strided_slice %328 {offsets = [0, 1], sizes = [8, 1], strides = [1, 1]} : vector<8x32xf32> to vector<8x1xf32>
    %335 = vector.broadcast %334 : vector<8x1xf32> to vector<8x128xf32>
    %336 = vector.broadcast %12 : vector<1x128xf32> to vector<8x128xf32>
    %337 = arith.mulf %335, %336 : vector<8x128xf32>
    %338 = arith.addf %333, %337 : vector<8x128xf32>
    %339 = vector.extract_strided_slice %328 {offsets = [0, 2], sizes = [8, 1], strides = [1, 1]} : vector<8x32xf32> to vector<8x1xf32>
    %340 = vector.broadcast %339 : vector<8x1xf32> to vector<8x128xf32>
    %341 = vector.broadcast %13 : vector<1x128xf32> to vector<8x128xf32>
    %342 = arith.mulf %340, %341 : vector<8x128xf32>
    %343 = arith.addf %338, %342 : vector<8x128xf32>
    %344 = vector.extract_strided_slice %290 {offsets = [0, 0], sizes = [8, 1], strides = [1, 1]} : vector<8x32xf32> to vector<8x1xf32>
    %345 = vector.broadcast %344 : vector<8x1xf32> to vector<8x128xf32>
    %346 = vector.broadcast %14 : vector<1x128xf32> to vector<8x128xf32>
    %347 = arith.mulf %345, %346 : vector<8x128xf32>
    %348 = arith.addf %343, %347 : vector<8x128xf32>
    %349 = vector.extract_strided_slice %290 {offsets = [0, 1], sizes = [8, 1], strides = [1, 1]} : vector<8x32xf32> to vector<8x1xf32>
    %350 = vector.broadcast %349 : vector<8x1xf32> to vector<8x128xf32>
    %351 = vector.broadcast %15 : vector<1x128xf32> to vector<8x128xf32>
    %352 = arith.mulf %350, %351 : vector<8x128xf32>
    %353 = arith.addf %348, %352 : vector<8x128xf32>
    %354 = vector.extract_strided_slice %290 {offsets = [0, 2], sizes = [8, 1], strides = [1, 1]} : vector<8x32xf32> to vector<8x1xf32>
    %355 = vector.broadcast %354 : vector<8x1xf32> to vector<8x128xf32>
    %356 = vector.broadcast %16 : vector<1x128xf32> to vector<8x128xf32>
    %357 = arith.mulf %355, %356 : vector<8x128xf32>
    %358 = arith.addf %353, %357 : vector<8x128xf32>
    %359 = math.tanh %358 : vector<8x128xf32>
    %360 = vector.extract_strided_slice %359 {offsets = [0, 0], sizes = [8, 32], strides = [1, 1]} : vector<8x128xf32> to vector<8x32xf32>
    %cst_49 = arith.constant 5.000000e-01 : f32
    %361 = vector.broadcast %cst_49 : f32 to vector<8x32xf32>
    %362 = arith.mulf %361, %360 : vector<8x32xf32>
    %cst_50 = arith.constant 5.000000e-01 : f32
    %363 = vector.broadcast %cst_50 : f32 to vector<8x32xf32>
    %364 = arith.addf %362, %363 : vector<8x32xf32>
    %365 = vector.extract_strided_slice %359 {offsets = [0, 32], sizes = [8, 32], strides = [1, 1]} : vector<8x128xf32> to vector<8x32xf32>
    %cst_51 = arith.constant 5.000000e-01 : f32
    %366 = vector.broadcast %cst_51 : f32 to vector<8x32xf32>
    %367 = arith.mulf %366, %365 : vector<8x32xf32>
    %cst_52 = arith.constant 5.000000e-01 : f32
    %368 = vector.broadcast %cst_52 : f32 to vector<8x32xf32>
    %369 = arith.addf %367, %368 : vector<8x32xf32>
    %370 = vector.extract_strided_slice %359 {offsets = [0, 64], sizes = [8, 32], strides = [1, 1]} : vector<8x128xf32> to vector<8x32xf32>
    %371 = vector.extract_strided_slice %359 {offsets = [0, 96], sizes = [8, 32], strides = [1, 1]} : vector<8x128xf32> to vector<8x32xf32>
    %cst_53 = arith.constant 5.000000e-01 : f32
    %372 = vector.broadcast %cst_53 : f32 to vector<8x32xf32>
    %373 = arith.mulf %372, %371 : vector<8x32xf32>
    %cst_54 = arith.constant 5.000000e-01 : f32
    %374 = vector.broadcast %cst_54 : f32 to vector<8x32xf32>
    %375 = arith.addf %373, %374 : vector<8x32xf32>
    %376 = arith.mulf %369, %288 : vector<8x32xf32>
    %377 = arith.mulf %364, %370 : vector<8x32xf32>
    %378 = arith.addf %376, %377 : vector<8x32xf32>
    %379 = math.tanh %378 : vector<8x32xf32>
    %380 = arith.mulf %375, %379 : vector<8x32xf32>
    %381 = vector.extract_strided_slice %7 {offsets = [32, 0], sizes = [8, 128], strides = [1, 1]} : vector<64x128xf32> to vector<8x128xf32>
    %382 = vector.extract_strided_slice %328 {offsets = [0, 0], sizes = [8, 1], strides = [1, 1]} : vector<8x32xf32> to vector<8x1xf32>
    %383 = vector.broadcast %382 : vector<8x1xf32> to vector<8x128xf32>
    %384 = vector.broadcast %8 : vector<1x128xf32> to vector<8x128xf32>
    %385 = arith.mulf %383, %384 : vector<8x128xf32>
    %386 = arith.addf %381, %385 : vector<8x128xf32>
    %387 = vector.extract_strided_slice %328 {offsets = [0, 1], sizes = [8, 1], strides = [1, 1]} : vector<8x32xf32> to vector<8x1xf32>
    %388 = vector.broadcast %387 : vector<8x1xf32> to vector<8x128xf32>
    %389 = vector.broadcast %9 : vector<1x128xf32> to vector<8x128xf32>
    %390 = arith.mulf %388, %389 : vector<8x128xf32>
    %391 = arith.addf %386, %390 : vector<8x128xf32>
    %392 = vector.extract_strided_slice %328 {offsets = [0, 2], sizes = [8, 1], strides = [1, 1]} : vector<8x32xf32> to vector<8x1xf32>
    %393 = vector.broadcast %392 : vector<8x1xf32> to vector<8x128xf32>
    %394 = vector.broadcast %10 : vector<1x128xf32> to vector<8x128xf32>
    %395 = arith.mulf %393, %394 : vector<8x128xf32>
    %396 = arith.addf %391, %395 : vector<8x128xf32>
    %397 = math.tanh %396 : vector<8x128xf32>
    %398 = vector.extract_strided_slice %397 {offsets = [0, 0], sizes = [8, 32], strides = [1, 1]} : vector<8x128xf32> to vector<8x32xf32>
    %cst_55 = arith.constant 5.000000e-01 : f32
    %399 = vector.broadcast %cst_55 : f32 to vector<8x32xf32>
    %400 = arith.mulf %399, %398 : vector<8x32xf32>
    %cst_56 = arith.constant 5.000000e-01 : f32
    %401 = vector.broadcast %cst_56 : f32 to vector<8x32xf32>
    %402 = arith.addf %400, %401 : vector<8x32xf32>
    %403 = vector.extract_strided_slice %397 {offsets = [0, 32], sizes = [8, 32], strides = [1, 1]} : vector<8x128xf32> to vector<8x32xf32>
    %cst_57 = arith.constant 5.000000e-01 : f32
    %404 = vector.broadcast %cst_57 : f32 to vector<8x32xf32>
    %405 = arith.mulf %404, %403 : vector<8x32xf32>
    %cst_58 = arith.constant 5.000000e-01 : f32
    %406 = vector.broadcast %cst_58 : f32 to vector<8x32xf32>
    %407 = arith.addf %405, %406 : vector<8x32xf32>
    %408 = vector.extract_strided_slice %397 {offsets = [0, 64], sizes = [8, 32], strides = [1, 1]} : vector<8x128xf32> to vector<8x32xf32>
    %409 = vector.extract_strided_slice %397 {offsets = [0, 96], sizes = [8, 32], strides = [1, 1]} : vector<8x128xf32> to vector<8x32xf32>
    %cst_59 = arith.constant 5.000000e-01 : f32
    %410 = vector.broadcast %cst_59 : f32 to vector<8x32xf32>
    %411 = arith.mulf %410, %409 : vector<8x32xf32>
    %cst_60 = arith.constant 5.000000e-01 : f32
    %412 = vector.broadcast %cst_60 : f32 to vector<8x32xf32>
    %413 = arith.addf %411, %412 : vector<8x32xf32>
    %414 = arith.mulf %407, %326 : vector<8x32xf32>
    %415 = arith.mulf %402, %408 : vector<8x32xf32>
    %416 = arith.addf %414, %415 : vector<8x32xf32>
    %417 = math.tanh %416 : vector<8x32xf32>
    %418 = arith.mulf %413, %417 : vector<8x32xf32>
    %419 = vector.extract_strided_slice %418 {offsets = [0, 0], sizes = [8, 1], strides = [1, 1]} : vector<8x32xf32> to vector<8x1xf32>
    %420 = vector.broadcast %419 : vector<8x1xf32> to vector<8x128xf32>
    %421 = vector.broadcast %11 : vector<1x128xf32> to vector<8x128xf32>
    %422 = arith.mulf %420, %421 : vector<8x128xf32>
    %423 = arith.addf %19, %422 : vector<8x128xf32>
    %424 = vector.extract_strided_slice %418 {offsets = [0, 1], sizes = [8, 1], strides = [1, 1]} : vector<8x32xf32> to vector<8x1xf32>
    %425 = vector.broadcast %424 : vector<8x1xf32> to vector<8x128xf32>
    %426 = vector.broadcast %12 : vector<1x128xf32> to vector<8x128xf32>
    %427 = arith.mulf %425, %426 : vector<8x128xf32>
    %428 = arith.addf %423, %427 : vector<8x128xf32>
    %429 = vector.extract_strided_slice %418 {offsets = [0, 2], sizes = [8, 1], strides = [1, 1]} : vector<8x32xf32> to vector<8x1xf32>
    %430 = vector.broadcast %429 : vector<8x1xf32> to vector<8x128xf32>
    %431 = vector.broadcast %13 : vector<1x128xf32> to vector<8x128xf32>
    %432 = arith.mulf %430, %431 : vector<8x128xf32>
    %433 = arith.addf %428, %432 : vector<8x128xf32>
    %434 = vector.extract_strided_slice %380 {offsets = [0, 0], sizes = [8, 1], strides = [1, 1]} : vector<8x32xf32> to vector<8x1xf32>
    %435 = vector.broadcast %434 : vector<8x1xf32> to vector<8x128xf32>
    %436 = vector.broadcast %14 : vector<1x128xf32> to vector<8x128xf32>
    %437 = arith.mulf %435, %436 : vector<8x128xf32>
    %438 = arith.addf %433, %437 : vector<8x128xf32>
    %439 = vector.extract_strided_slice %380 {offsets = [0, 1], sizes = [8, 1], strides = [1, 1]} : vector<8x32xf32> to vector<8x1xf32>
    %440 = vector.broadcast %439 : vector<8x1xf32> to vector<8x128xf32>
    %441 = vector.broadcast %15 : vector<1x128xf32> to vector<8x128xf32>
    %442 = arith.mulf %440, %441 : vector<8x128xf32>
    %443 = arith.addf %438, %442 : vector<8x128xf32>
    %444 = vector.extract_strided_slice %380 {offsets = [0, 2], sizes = [8, 1], strides = [1, 1]} : vector<8x32xf32> to vector<8x1xf32>
    %445 = vector.broadcast %444 : vector<8x1xf32> to vector<8x128xf32>
    %446 = vector.broadcast %16 : vector<1x128xf32> to vector<8x128xf32>
    %447 = arith.mulf %445, %446 : vector<8x128xf32>
    %448 = arith.addf %443, %447 : vector<8x128xf32>
    %449 = math.tanh %448 : vector<8x128xf32>
    %450 = vector.extract_strided_slice %449 {offsets = [0, 0], sizes = [8, 32], strides = [1, 1]} : vector<8x128xf32> to vector<8x32xf32>
    %cst_61 = arith.constant 5.000000e-01 : f32
    %451 = vector.broadcast %cst_61 : f32 to vector<8x32xf32>
    %452 = arith.mulf %451, %450 : vector<8x32xf32>
    %cst_62 = arith.constant 5.000000e-01 : f32
    %453 = vector.broadcast %cst_62 : f32 to vector<8x32xf32>
    %454 = arith.addf %452, %453 : vector<8x32xf32>
    %455 = vector.extract_strided_slice %449 {offsets = [0, 32], sizes = [8, 32], strides = [1, 1]} : vector<8x128xf32> to vector<8x32xf32>
    %cst_63 = arith.constant 5.000000e-01 : f32
    %456 = vector.broadcast %cst_63 : f32 to vector<8x32xf32>
    %457 = arith.mulf %456, %455 : vector<8x32xf32>
    %cst_64 = arith.constant 5.000000e-01 : f32
    %458 = vector.broadcast %cst_64 : f32 to vector<8x32xf32>
    %459 = arith.addf %457, %458 : vector<8x32xf32>
    %460 = vector.extract_strided_slice %449 {offsets = [0, 64], sizes = [8, 32], strides = [1, 1]} : vector<8x128xf32> to vector<8x32xf32>
    %461 = vector.extract_strided_slice %449 {offsets = [0, 96], sizes = [8, 32], strides = [1, 1]} : vector<8x128xf32> to vector<8x32xf32>
    %cst_65 = arith.constant 5.000000e-01 : f32
    %462 = vector.broadcast %cst_65 : f32 to vector<8x32xf32>
    %463 = arith.mulf %462, %461 : vector<8x32xf32>
    %cst_66 = arith.constant 5.000000e-01 : f32
    %464 = vector.broadcast %cst_66 : f32 to vector<8x32xf32>
    %465 = arith.addf %463, %464 : vector<8x32xf32>
    %466 = arith.mulf %459, %378 : vector<8x32xf32>
    %467 = arith.mulf %454, %460 : vector<8x32xf32>
    %468 = arith.addf %466, %467 : vector<8x32xf32>
    %469 = math.tanh %468 : vector<8x32xf32>
    %470 = arith.mulf %465, %469 : vector<8x32xf32>
    %471 = vector.extract_strided_slice %7 {offsets = [40, 0], sizes = [8, 128], strides = [1, 1]} : vector<64x128xf32> to vector<8x128xf32>
    %472 = vector.extract_strided_slice %418 {offsets = [0, 0], sizes = [8, 1], strides = [1, 1]} : vector<8x32xf32> to vector<8x1xf32>
    %473 = vector.broadcast %472 : vector<8x1xf32> to vector<8x128xf32>
    %474 = vector.broadcast %8 : vector<1x128xf32> to vector<8x128xf32>
    %475 = arith.mulf %473, %474 : vector<8x128xf32>
    %476 = arith.addf %471, %475 : vector<8x128xf32>
    %477 = vector.extract_strided_slice %418 {offsets = [0, 1], sizes = [8, 1], strides = [1, 1]} : vector<8x32xf32> to vector<8x1xf32>
    %478 = vector.broadcast %477 : vector<8x1xf32> to vector<8x128xf32>
    %479 = vector.broadcast %9 : vector<1x128xf32> to vector<8x128xf32>
    %480 = arith.mulf %478, %479 : vector<8x128xf32>
    %481 = arith.addf %476, %480 : vector<8x128xf32>
    %482 = vector.extract_strided_slice %418 {offsets = [0, 2], sizes = [8, 1], strides = [1, 1]} : vector<8x32xf32> to vector<8x1xf32>
    %483 = vector.broadcast %482 : vector<8x1xf32> to vector<8x128xf32>
    %484 = vector.broadcast %10 : vector<1x128xf32> to vector<8x128xf32>
    %485 = arith.mulf %483, %484 : vector<8x128xf32>
    %486 = arith.addf %481, %485 : vector<8x128xf32>
    %487 = math.tanh %486 : vector<8x128xf32>
    %488 = vector.extract_strided_slice %487 {offsets = [0, 0], sizes = [8, 32], strides = [1, 1]} : vector<8x128xf32> to vector<8x32xf32>
    %cst_67 = arith.constant 5.000000e-01 : f32
    %489 = vector.broadcast %cst_67 : f32 to vector<8x32xf32>
    %490 = arith.mulf %489, %488 : vector<8x32xf32>
    %cst_68 = arith.constant 5.000000e-01 : f32
    %491 = vector.broadcast %cst_68 : f32 to vector<8x32xf32>
    %492 = arith.addf %490, %491 : vector<8x32xf32>
    %493 = vector.extract_strided_slice %487 {offsets = [0, 32], sizes = [8, 32], strides = [1, 1]} : vector<8x128xf32> to vector<8x32xf32>
    %cst_69 = arith.constant 5.000000e-01 : f32
    %494 = vector.broadcast %cst_69 : f32 to vector<8x32xf32>
    %495 = arith.mulf %494, %493 : vector<8x32xf32>
    %cst_70 = arith.constant 5.000000e-01 : f32
    %496 = vector.broadcast %cst_70 : f32 to vector<8x32xf32>
    %497 = arith.addf %495, %496 : vector<8x32xf32>
    %498 = vector.extract_strided_slice %487 {offsets = [0, 64], sizes = [8, 32], strides = [1, 1]} : vector<8x128xf32> to vector<8x32xf32>
    %499 = vector.extract_strided_slice %487 {offsets = [0, 96], sizes = [8, 32], strides = [1, 1]} : vector<8x128xf32> to vector<8x32xf32>
    %cst_71 = arith.constant 5.000000e-01 : f32
    %500 = vector.broadcast %cst_71 : f32 to vector<8x32xf32>
    %501 = arith.mulf %500, %499 : vector<8x32xf32>
    %cst_72 = arith.constant 5.000000e-01 : f32
    %502 = vector.broadcast %cst_72 : f32 to vector<8x32xf32>
    %503 = arith.addf %501, %502 : vector<8x32xf32>
    %504 = arith.mulf %497, %416 : vector<8x32xf32>
    %505 = arith.mulf %492, %498 : vector<8x32xf32>
    %506 = arith.addf %504, %505 : vector<8x32xf32>
    %507 = math.tanh %506 : vector<8x32xf32>
    %508 = arith.mulf %503, %507 : vector<8x32xf32>
    %509 = vector.extract_strided_slice %508 {offsets = [0, 0], sizes = [8, 1], strides = [1, 1]} : vector<8x32xf32> to vector<8x1xf32>
    %510 = vector.broadcast %509 : vector<8x1xf32> to vector<8x128xf32>
    %511 = vector.broadcast %11 : vector<1x128xf32> to vector<8x128xf32>
    %512 = arith.mulf %510, %511 : vector<8x128xf32>
    %513 = arith.addf %19, %512 : vector<8x128xf32>
    %514 = vector.extract_strided_slice %508 {offsets = [0, 1], sizes = [8, 1], strides = [1, 1]} : vector<8x32xf32> to vector<8x1xf32>
    %515 = vector.broadcast %514 : vector<8x1xf32> to vector<8x128xf32>
    %516 = vector.broadcast %12 : vector<1x128xf32> to vector<8x128xf32>
    %517 = arith.mulf %515, %516 : vector<8x128xf32>
    %518 = arith.addf %513, %517 : vector<8x128xf32>
    %519 = vector.extract_strided_slice %508 {offsets = [0, 2], sizes = [8, 1], strides = [1, 1]} : vector<8x32xf32> to vector<8x1xf32>
    %520 = vector.broadcast %519 : vector<8x1xf32> to vector<8x128xf32>
    %521 = vector.broadcast %13 : vector<1x128xf32> to vector<8x128xf32>
    %522 = arith.mulf %520, %521 : vector<8x128xf32>
    %523 = arith.addf %518, %522 : vector<8x128xf32>
    %524 = vector.extract_strided_slice %470 {offsets = [0, 0], sizes = [8, 1], strides = [1, 1]} : vector<8x32xf32> to vector<8x1xf32>
    %525 = vector.broadcast %524 : vector<8x1xf32> to vector<8x128xf32>
    %526 = vector.broadcast %14 : vector<1x128xf32> to vector<8x128xf32>
    %527 = arith.mulf %525, %526 : vector<8x128xf32>
    %528 = arith.addf %523, %527 : vector<8x128xf32>
    %529 = vector.extract_strided_slice %470 {offsets = [0, 1], sizes = [8, 1], strides = [1, 1]} : vector<8x32xf32> to vector<8x1xf32>
    %530 = vector.broadcast %529 : vector<8x1xf32> to vector<8x128xf32>
    %531 = vector.broadcast %15 : vector<1x128xf32> to vector<8x128xf32>
    %532 = arith.mulf %530, %531 : vector<8x128xf32>
    %533 = arith.addf %528, %532 : vector<8x128xf32>
    %534 = vector.extract_strided_slice %470 {offsets = [0, 2], sizes = [8, 1], strides = [1, 1]} : vector<8x32xf32> to vector<8x1xf32>
    %535 = vector.broadcast %534 : vector<8x1xf32> to vector<8x128xf32>
    %536 = vector.broadcast %16 : vector<1x128xf32> to vector<8x128xf32>
    %537 = arith.mulf %535, %536 : vector<8x128xf32>
    %538 = arith.addf %533, %537 : vector<8x128xf32>
    %539 = math.tanh %538 : vector<8x128xf32>
    %540 = vector.extract_strided_slice %539 {offsets = [0, 0], sizes = [8, 32], strides = [1, 1]} : vector<8x128xf32> to vector<8x32xf32>
    %cst_73 = arith.constant 5.000000e-01 : f32
    %541 = vector.broadcast %cst_73 : f32 to vector<8x32xf32>
    %542 = arith.mulf %541, %540 : vector<8x32xf32>
    %cst_74 = arith.constant 5.000000e-01 : f32
    %543 = vector.broadcast %cst_74 : f32 to vector<8x32xf32>
    %544 = arith.addf %542, %543 : vector<8x32xf32>
    %545 = vector.extract_strided_slice %539 {offsets = [0, 32], sizes = [8, 32], strides = [1, 1]} : vector<8x128xf32> to vector<8x32xf32>
    %cst_75 = arith.constant 5.000000e-01 : f32
    %546 = vector.broadcast %cst_75 : f32 to vector<8x32xf32>
    %547 = arith.mulf %546, %545 : vector<8x32xf32>
    %cst_76 = arith.constant 5.000000e-01 : f32
    %548 = vector.broadcast %cst_76 : f32 to vector<8x32xf32>
    %549 = arith.addf %547, %548 : vector<8x32xf32>
    %550 = vector.extract_strided_slice %539 {offsets = [0, 64], sizes = [8, 32], strides = [1, 1]} : vector<8x128xf32> to vector<8x32xf32>
    %551 = vector.extract_strided_slice %539 {offsets = [0, 96], sizes = [8, 32], strides = [1, 1]} : vector<8x128xf32> to vector<8x32xf32>
    %cst_77 = arith.constant 5.000000e-01 : f32
    %552 = vector.broadcast %cst_77 : f32 to vector<8x32xf32>
    %553 = arith.mulf %552, %551 : vector<8x32xf32>
    %cst_78 = arith.constant 5.000000e-01 : f32
    %554 = vector.broadcast %cst_78 : f32 to vector<8x32xf32>
    %555 = arith.addf %553, %554 : vector<8x32xf32>
    %556 = arith.mulf %549, %468 : vector<8x32xf32>
    %557 = arith.mulf %544, %550 : vector<8x32xf32>
    %558 = arith.addf %556, %557 : vector<8x32xf32>
    %559 = math.tanh %558 : vector<8x32xf32>
    %560 = arith.mulf %555, %559 : vector<8x32xf32>
    %561 = vector.extract_strided_slice %7 {offsets = [48, 0], sizes = [8, 128], strides = [1, 1]} : vector<64x128xf32> to vector<8x128xf32>
    %562 = vector.extract_strided_slice %508 {offsets = [0, 0], sizes = [8, 1], strides = [1, 1]} : vector<8x32xf32> to vector<8x1xf32>
    %563 = vector.broadcast %562 : vector<8x1xf32> to vector<8x128xf32>
    %564 = vector.broadcast %8 : vector<1x128xf32> to vector<8x128xf32>
    %565 = arith.mulf %563, %564 : vector<8x128xf32>
    %566 = arith.addf %561, %565 : vector<8x128xf32>
    %567 = vector.extract_strided_slice %508 {offsets = [0, 1], sizes = [8, 1], strides = [1, 1]} : vector<8x32xf32> to vector<8x1xf32>
    %568 = vector.broadcast %567 : vector<8x1xf32> to vector<8x128xf32>
    %569 = vector.broadcast %9 : vector<1x128xf32> to vector<8x128xf32>
    %570 = arith.mulf %568, %569 : vector<8x128xf32>
    %571 = arith.addf %566, %570 : vector<8x128xf32>
    %572 = vector.extract_strided_slice %508 {offsets = [0, 2], sizes = [8, 1], strides = [1, 1]} : vector<8x32xf32> to vector<8x1xf32>
    %573 = vector.broadcast %572 : vector<8x1xf32> to vector<8x128xf32>
    %574 = vector.broadcast %10 : vector<1x128xf32> to vector<8x128xf32>
    %575 = arith.mulf %573, %574 : vector<8x128xf32>
    %576 = arith.addf %571, %575 : vector<8x128xf32>
    %577 = math.tanh %576 : vector<8x128xf32>
    %578 = vector.extract_strided_slice %577 {offsets = [0, 0], sizes = [8, 32], strides = [1, 1]} : vector<8x128xf32> to vector<8x32xf32>
    %cst_79 = arith.constant 5.000000e-01 : f32
    %579 = vector.broadcast %cst_79 : f32 to vector<8x32xf32>
    %580 = arith.mulf %579, %578 : vector<8x32xf32>
    %cst_80 = arith.constant 5.000000e-01 : f32
    %581 = vector.broadcast %cst_80 : f32 to vector<8x32xf32>
    %582 = arith.addf %580, %581 : vector<8x32xf32>
    %583 = vector.extract_strided_slice %577 {offsets = [0, 32], sizes = [8, 32], strides = [1, 1]} : vector<8x128xf32> to vector<8x32xf32>
    %cst_81 = arith.constant 5.000000e-01 : f32
    %584 = vector.broadcast %cst_81 : f32 to vector<8x32xf32>
    %585 = arith.mulf %584, %583 : vector<8x32xf32>
    %cst_82 = arith.constant 5.000000e-01 : f32
    %586 = vector.broadcast %cst_82 : f32 to vector<8x32xf32>
    %587 = arith.addf %585, %586 : vector<8x32xf32>
    %588 = vector.extract_strided_slice %577 {offsets = [0, 64], sizes = [8, 32], strides = [1, 1]} : vector<8x128xf32> to vector<8x32xf32>
    %589 = vector.extract_strided_slice %577 {offsets = [0, 96], sizes = [8, 32], strides = [1, 1]} : vector<8x128xf32> to vector<8x32xf32>
    %cst_83 = arith.constant 5.000000e-01 : f32
    %590 = vector.broadcast %cst_83 : f32 to vector<8x32xf32>
    %591 = arith.mulf %590, %589 : vector<8x32xf32>
    %cst_84 = arith.constant 5.000000e-01 : f32
    %592 = vector.broadcast %cst_84 : f32 to vector<8x32xf32>
    %593 = arith.addf %591, %592 : vector<8x32xf32>
    %594 = arith.mulf %587, %506 : vector<8x32xf32>
    %595 = arith.mulf %582, %588 : vector<8x32xf32>
    %596 = arith.addf %594, %595 : vector<8x32xf32>
    %597 = math.tanh %596 : vector<8x32xf32>
    %598 = arith.mulf %593, %597 : vector<8x32xf32>
    %599 = vector.extract_strided_slice %598 {offsets = [0, 0], sizes = [8, 1], strides = [1, 1]} : vector<8x32xf32> to vector<8x1xf32>
    %600 = vector.broadcast %599 : vector<8x1xf32> to vector<8x128xf32>
    %601 = vector.broadcast %11 : vector<1x128xf32> to vector<8x128xf32>
    %602 = arith.mulf %600, %601 : vector<8x128xf32>
    %603 = arith.addf %19, %602 : vector<8x128xf32>
    %604 = vector.extract_strided_slice %598 {offsets = [0, 1], sizes = [8, 1], strides = [1, 1]} : vector<8x32xf32> to vector<8x1xf32>
    %605 = vector.broadcast %604 : vector<8x1xf32> to vector<8x128xf32>
    %606 = vector.broadcast %12 : vector<1x128xf32> to vector<8x128xf32>
    %607 = arith.mulf %605, %606 : vector<8x128xf32>
    %608 = arith.addf %603, %607 : vector<8x128xf32>
    %609 = vector.extract_strided_slice %598 {offsets = [0, 2], sizes = [8, 1], strides = [1, 1]} : vector<8x32xf32> to vector<8x1xf32>
    %610 = vector.broadcast %609 : vector<8x1xf32> to vector<8x128xf32>
    %611 = vector.broadcast %13 : vector<1x128xf32> to vector<8x128xf32>
    %612 = arith.mulf %610, %611 : vector<8x128xf32>
    %613 = arith.addf %608, %612 : vector<8x128xf32>
    %614 = vector.extract_strided_slice %560 {offsets = [0, 0], sizes = [8, 1], strides = [1, 1]} : vector<8x32xf32> to vector<8x1xf32>
    %615 = vector.broadcast %614 : vector<8x1xf32> to vector<8x128xf32>
    %616 = vector.broadcast %14 : vector<1x128xf32> to vector<8x128xf32>
    %617 = arith.mulf %615, %616 : vector<8x128xf32>
    %618 = arith.addf %613, %617 : vector<8x128xf32>
    %619 = vector.extract_strided_slice %560 {offsets = [0, 1], sizes = [8, 1], strides = [1, 1]} : vector<8x32xf32> to vector<8x1xf32>
    %620 = vector.broadcast %619 : vector<8x1xf32> to vector<8x128xf32>
    %621 = vector.broadcast %15 : vector<1x128xf32> to vector<8x128xf32>
    %622 = arith.mulf %620, %621 : vector<8x128xf32>
    %623 = arith.addf %618, %622 : vector<8x128xf32>
    %624 = vector.extract_strided_slice %560 {offsets = [0, 2], sizes = [8, 1], strides = [1, 1]} : vector<8x32xf32> to vector<8x1xf32>
    %625 = vector.broadcast %624 : vector<8x1xf32> to vector<8x128xf32>
    %626 = vector.broadcast %16 : vector<1x128xf32> to vector<8x128xf32>
    %627 = arith.mulf %625, %626 : vector<8x128xf32>
    %628 = arith.addf %623, %627 : vector<8x128xf32>
    %629 = math.tanh %628 : vector<8x128xf32>
    %630 = vector.extract_strided_slice %629 {offsets = [0, 0], sizes = [8, 32], strides = [1, 1]} : vector<8x128xf32> to vector<8x32xf32>
    %cst_85 = arith.constant 5.000000e-01 : f32
    %631 = vector.broadcast %cst_85 : f32 to vector<8x32xf32>
    %632 = arith.mulf %631, %630 : vector<8x32xf32>
    %cst_86 = arith.constant 5.000000e-01 : f32
    %633 = vector.broadcast %cst_86 : f32 to vector<8x32xf32>
    %634 = arith.addf %632, %633 : vector<8x32xf32>
    %635 = vector.extract_strided_slice %629 {offsets = [0, 32], sizes = [8, 32], strides = [1, 1]} : vector<8x128xf32> to vector<8x32xf32>
    %cst_87 = arith.constant 5.000000e-01 : f32
    %636 = vector.broadcast %cst_87 : f32 to vector<8x32xf32>
    %637 = arith.mulf %636, %635 : vector<8x32xf32>
    %cst_88 = arith.constant 5.000000e-01 : f32
    %638 = vector.broadcast %cst_88 : f32 to vector<8x32xf32>
    %639 = arith.addf %637, %638 : vector<8x32xf32>
    %640 = vector.extract_strided_slice %629 {offsets = [0, 64], sizes = [8, 32], strides = [1, 1]} : vector<8x128xf32> to vector<8x32xf32>
    %641 = vector.extract_strided_slice %629 {offsets = [0, 96], sizes = [8, 32], strides = [1, 1]} : vector<8x128xf32> to vector<8x32xf32>
    %cst_89 = arith.constant 5.000000e-01 : f32
    %642 = vector.broadcast %cst_89 : f32 to vector<8x32xf32>
    %643 = arith.mulf %642, %641 : vector<8x32xf32>
    %cst_90 = arith.constant 5.000000e-01 : f32
    %644 = vector.broadcast %cst_90 : f32 to vector<8x32xf32>
    %645 = arith.addf %643, %644 : vector<8x32xf32>
    %646 = arith.mulf %639, %558 : vector<8x32xf32>
    %647 = arith.mulf %634, %640 : vector<8x32xf32>
    %648 = arith.addf %646, %647 : vector<8x32xf32>
    %649 = math.tanh %648 : vector<8x32xf32>
    %650 = arith.mulf %645, %649 : vector<8x32xf32>
    %651 = vector.extract_strided_slice %7 {offsets = [56, 0], sizes = [8, 128], strides = [1, 1]} : vector<64x128xf32> to vector<8x128xf32>
    %652 = vector.extract_strided_slice %598 {offsets = [0, 0], sizes = [8, 1], strides = [1, 1]} : vector<8x32xf32> to vector<8x1xf32>
    %653 = vector.broadcast %652 : vector<8x1xf32> to vector<8x128xf32>
    %654 = vector.broadcast %8 : vector<1x128xf32> to vector<8x128xf32>
    %655 = arith.mulf %653, %654 : vector<8x128xf32>
    %656 = arith.addf %651, %655 : vector<8x128xf32>
    %657 = vector.extract_strided_slice %598 {offsets = [0, 1], sizes = [8, 1], strides = [1, 1]} : vector<8x32xf32> to vector<8x1xf32>
    %658 = vector.broadcast %657 : vector<8x1xf32> to vector<8x128xf32>
    %659 = vector.broadcast %9 : vector<1x128xf32> to vector<8x128xf32>
    %660 = arith.mulf %658, %659 : vector<8x128xf32>
    %661 = arith.addf %656, %660 : vector<8x128xf32>
    %662 = vector.extract_strided_slice %598 {offsets = [0, 2], sizes = [8, 1], strides = [1, 1]} : vector<8x32xf32> to vector<8x1xf32>
    %663 = vector.broadcast %662 : vector<8x1xf32> to vector<8x128xf32>
    %664 = vector.broadcast %10 : vector<1x128xf32> to vector<8x128xf32>
    %665 = arith.mulf %663, %664 : vector<8x128xf32>
    %666 = arith.addf %661, %665 : vector<8x128xf32>
    %667 = math.tanh %666 : vector<8x128xf32>
    %668 = vector.extract_strided_slice %667 {offsets = [0, 0], sizes = [8, 32], strides = [1, 1]} : vector<8x128xf32> to vector<8x32xf32>
    %cst_91 = arith.constant 5.000000e-01 : f32
    %669 = vector.broadcast %cst_91 : f32 to vector<8x32xf32>
    %670 = arith.mulf %669, %668 : vector<8x32xf32>
    %cst_92 = arith.constant 5.000000e-01 : f32
    %671 = vector.broadcast %cst_92 : f32 to vector<8x32xf32>
    %672 = arith.addf %670, %671 : vector<8x32xf32>
    %673 = vector.extract_strided_slice %667 {offsets = [0, 32], sizes = [8, 32], strides = [1, 1]} : vector<8x128xf32> to vector<8x32xf32>
    %cst_93 = arith.constant 5.000000e-01 : f32
    %674 = vector.broadcast %cst_93 : f32 to vector<8x32xf32>
    %675 = arith.mulf %674, %673 : vector<8x32xf32>
    %cst_94 = arith.constant 5.000000e-01 : f32
    %676 = vector.broadcast %cst_94 : f32 to vector<8x32xf32>
    %677 = arith.addf %675, %676 : vector<8x32xf32>
    %678 = vector.extract_strided_slice %667 {offsets = [0, 64], sizes = [8, 32], strides = [1, 1]} : vector<8x128xf32> to vector<8x32xf32>
    %679 = vector.extract_strided_slice %667 {offsets = [0, 96], sizes = [8, 32], strides = [1, 1]} : vector<8x128xf32> to vector<8x32xf32>
    %cst_95 = arith.constant 5.000000e-01 : f32
    %680 = vector.broadcast %cst_95 : f32 to vector<8x32xf32>
    %681 = arith.mulf %680, %679 : vector<8x32xf32>
    %cst_96 = arith.constant 5.000000e-01 : f32
    %682 = vector.broadcast %cst_96 : f32 to vector<8x32xf32>
    %683 = arith.addf %681, %682 : vector<8x32xf32>
    %684 = arith.mulf %677, %596 : vector<8x32xf32>
    %685 = arith.mulf %672, %678 : vector<8x32xf32>
    %686 = arith.addf %684, %685 : vector<8x32xf32>
    %687 = math.tanh %686 : vector<8x32xf32>
    %688 = arith.mulf %683, %687 : vector<8x32xf32>
    %689 = vector.extract_strided_slice %688 {offsets = [0, 0], sizes = [8, 1], strides = [1, 1]} : vector<8x32xf32> to vector<8x1xf32>
    %690 = vector.broadcast %689 : vector<8x1xf32> to vector<8x128xf32>
    %691 = vector.broadcast %11 : vector<1x128xf32> to vector<8x128xf32>
    %692 = arith.mulf %690, %691 : vector<8x128xf32>
    %693 = arith.addf %19, %692 : vector<8x128xf32>
    %694 = vector.extract_strided_slice %688 {offsets = [0, 1], sizes = [8, 1], strides = [1, 1]} : vector<8x32xf32> to vector<8x1xf32>
    %695 = vector.broadcast %694 : vector<8x1xf32> to vector<8x128xf32>
    %696 = vector.broadcast %12 : vector<1x128xf32> to vector<8x128xf32>
    %697 = arith.mulf %695, %696 : vector<8x128xf32>
    %698 = arith.addf %693, %697 : vector<8x128xf32>
    %699 = vector.extract_strided_slice %688 {offsets = [0, 2], sizes = [8, 1], strides = [1, 1]} : vector<8x32xf32> to vector<8x1xf32>
    %700 = vector.broadcast %699 : vector<8x1xf32> to vector<8x128xf32>
    %701 = vector.broadcast %13 : vector<1x128xf32> to vector<8x128xf32>
    %702 = arith.mulf %700, %701 : vector<8x128xf32>
    %703 = arith.addf %698, %702 : vector<8x128xf32>
    %704 = vector.extract_strided_slice %650 {offsets = [0, 0], sizes = [8, 1], strides = [1, 1]} : vector<8x32xf32> to vector<8x1xf32>
    %705 = vector.broadcast %704 : vector<8x1xf32> to vector<8x128xf32>
    %706 = vector.broadcast %14 : vector<1x128xf32> to vector<8x128xf32>
    %707 = arith.mulf %705, %706 : vector<8x128xf32>
    %708 = arith.addf %703, %707 : vector<8x128xf32>
    %709 = vector.extract_strided_slice %650 {offsets = [0, 1], sizes = [8, 1], strides = [1, 1]} : vector<8x32xf32> to vector<8x1xf32>
    %710 = vector.broadcast %709 : vector<8x1xf32> to vector<8x128xf32>
    %711 = vector.broadcast %15 : vector<1x128xf32> to vector<8x128xf32>
    %712 = arith.mulf %710, %711 : vector<8x128xf32>
    %713 = arith.addf %708, %712 : vector<8x128xf32>
    %714 = vector.extract_strided_slice %650 {offsets = [0, 2], sizes = [8, 1], strides = [1, 1]} : vector<8x32xf32> to vector<8x1xf32>
    %715 = vector.broadcast %714 : vector<8x1xf32> to vector<8x128xf32>
    %716 = vector.broadcast %16 : vector<1x128xf32> to vector<8x128xf32>
    %717 = arith.mulf %715, %716 : vector<8x128xf32>
    %718 = arith.addf %713, %717 : vector<8x128xf32>
    %719 = math.tanh %718 : vector<8x128xf32>
    %720 = vector.extract_strided_slice %719 {offsets = [0, 0], sizes = [8, 32], strides = [1, 1]} : vector<8x128xf32> to vector<8x32xf32>
    %cst_97 = arith.constant 5.000000e-01 : f32
    %721 = vector.broadcast %cst_97 : f32 to vector<8x32xf32>
    %722 = arith.mulf %721, %720 : vector<8x32xf32>
    %cst_98 = arith.constant 5.000000e-01 : f32
    %723 = vector.broadcast %cst_98 : f32 to vector<8x32xf32>
    %724 = arith.addf %722, %723 : vector<8x32xf32>
    %725 = vector.extract_strided_slice %719 {offsets = [0, 32], sizes = [8, 32], strides = [1, 1]} : vector<8x128xf32> to vector<8x32xf32>
    %cst_99 = arith.constant 5.000000e-01 : f32
    %726 = vector.broadcast %cst_99 : f32 to vector<8x32xf32>
    %727 = arith.mulf %726, %725 : vector<8x32xf32>
    %cst_100 = arith.constant 5.000000e-01 : f32
    %728 = vector.broadcast %cst_100 : f32 to vector<8x32xf32>
    %729 = arith.addf %727, %728 : vector<8x32xf32>
    %730 = vector.extract_strided_slice %719 {offsets = [0, 64], sizes = [8, 32], strides = [1, 1]} : vector<8x128xf32> to vector<8x32xf32>
    %731 = vector.extract_strided_slice %719 {offsets = [0, 96], sizes = [8, 32], strides = [1, 1]} : vector<8x128xf32> to vector<8x32xf32>
    %cst_101 = arith.constant 5.000000e-01 : f32
    %732 = vector.broadcast %cst_101 : f32 to vector<8x32xf32>
    %733 = arith.mulf %732, %731 : vector<8x32xf32>
    %cst_102 = arith.constant 5.000000e-01 : f32
    %734 = vector.broadcast %cst_102 : f32 to vector<8x32xf32>
    %735 = arith.addf %733, %734 : vector<8x32xf32>
    %736 = arith.mulf %729, %648 : vector<8x32xf32>
    %737 = arith.mulf %724, %730 : vector<8x32xf32>
    %738 = arith.addf %736, %737 : vector<8x32xf32>
    %739 = math.tanh %738 : vector<8x32xf32>
    %740 = arith.mulf %735, %739 : vector<8x32xf32>
    %741 = vector.extract_strided_slice %0 {offsets = [16, 0], sizes = [8, 32], strides = [1, 1]} : vector<24x128xf32> to vector<8x32xf32>
    %cst_103 = arith.constant dense<0.000000e+00> : vector<8x8xf32>
    %742 = tpu.matmul %741, %740, %cst_103 {dimension_numbers = #tpu.dot_dimension_numbers<[1], [1], [0], [0], [0, 0, 1, 0], [], []>} : vector<8x32xf32>, vector<8x32xf32>, vector<8x8xf32> -> vector<8x8xf32>
    %743 = vector.extract_strided_slice %742 {offsets = [0, 0], sizes = [1, 8], strides = [1, 1]} : vector<8x8xf32> to vector<1x8xf32>
    %744 = vector.extract_strided_slice %0 {offsets = [11, 0], sizes = [1, 8], strides = [1, 1]} : vector<24x128xf32> to vector<1x8xf32>
    %745 = arith.addf %743, %744 : vector<1x8xf32>
    %c0_104 = arith.constant 0 : index
    %c0_105 = arith.constant 0 : index
    %c0_106 = arith.constant 0 : index
    %746 = vector.load %arg4[%c0_104, %c0_105, %c0_106] : memref<1x1x8xf32, #tpu.memory_space<vmem>>, vector<1x1x8xf32>
    %747 = vector.shape_cast %746 : vector<1x1x8xf32> to vector<1x8xf32>
    %748 = vector.shape_cast %745 : vector<1x8xf32> to vector<1x1x8xf32>
    tpu.vector_store %arg4[%c0_104, %c0_105, %c0_106], %748 {strides = array<i32>} : memref<1x1x8xf32, #tpu.memory_space<vmem>>, vector<1x1x8xf32>,
    return
  }
  func.func @transform_0(%arg0: i32) -> (i32, i32, i32) {
    %c0_i32 = arith.constant 0 : i32
    %c0_i32_0 = arith.constant 0 : i32
    %c0_i32_1 = arith.constant 0 : i32
    return %arg0, %c0_i32, %c0_i32_0 : i32, i32, i32
  }
  func.func @transform_1(%arg0: i32) -> (i32, i32) {
    %c0_i32 = arith.constant 0 : i32
    %c0_i32_0 = arith.constant 0 : i32
    %c0_i32_1 = arith.constant 0 : i32
    return %c0_i32, %c0_i32_0 : i32, i32
  }
  func.func @transform_2(%arg0: i32) -> (i32, i32) {
    %c0_i32 = arith.constant 0 : i32
    %c0_i32_0 = arith.constant 0 : i32
    %c0_i32_1 = arith.constant 0 : i32
    return %c0_i32, %c0_i32_0 : i32, i32
  }
  func.func @transform_3(%arg0: i32) -> (i32, i32, i32) {
    %c0_i32 = arith.constant 0 : i32
    %c0_i32_0 = arith.constant 0 : i32
    %c0_i32_1 = arith.constant 0 : i32
    return %arg0, %c0_i32, %c0_i32_0 : i32, i32, i32
  }
}

</mosaic_0001>

<bundles_post_ra>
// kernel: tpu_custom_call.1
= control target key start
LH: loop header
LB: loop body
LE: loop exit
PB: predicated region body
PF: predicated region fallthrough
CT: control target
= control target key end

     0   :  { %vm35_vm0 = vcmask 326656   ;;  %s1531_s0 = inlined_call_operand.vmem [shape: f32[1,64,40], index: 0, kind: input, shape index: {}]   ;;  %s1532_s1 = inlined_call_operand.vmem [shape: f32[40,128], index: 1, kind: input, shape index: {}]   ;;  %s1533_s2 = inlined_call_operand.vmem [shape: f32[24,128], index: 2, kind: input, shape index: {}]   ;;  %s1534_s3 = inlined_call_operand.hbm [shape: f32[1,1,8], index: 3, kind: output, shape index: {}]  }
   0x1   :  { %v26_v0 = vld [vmem:[%s1532_s1] sm:$0xff]  ;;  %v27_v1 = vld [vmem:[%s1532_s1 + $0x8] sm:$0xff]  ;;  %v28_v2 = vld [vmem:[%s1532_s1 + $0x10] sm:$0xff] }
   0x2   :  { %v1015_v3 = vpack.c.bf16 %v27_v1, %v26_v0  ;;  %v29_v4 = vld [vmem:[%s1532_s1 + $0x18] sm:$0xff]  ;;  %v18_v5 = vld [vmem:[%s1531_s0] sm:$0xff] }
   0x3   :  { %v1019_v6 = vpack.c.bf16 %v29_v4, %v28_v2  ;;  %998 = vmatprep.mubr.msk.f32.mxu0 %vm35_vm0, %v18_v5 }
   0x4   :  { %8 = vsyncpa [#allocation3], 0  ;;  %1016 = vmatprep.subr.bf16.mxu0 %v1015_v3  ;;  %1023 = vmatprep.subr.bf16.mxu1 %v1015_v3  ;;  %v30_v7 = vld [vmem:[%s1532_s1 + $0x20] sm:$0xff]  ;;  %v19_v8 = vld [vmem:[%s1531_s0 + $0x8] sm:$0xff]  ;;  %v31_v9 = vlaneseq  ;;  %s1160_s1 = smov 64   ;;  %s1161_s28 = smov 32  }
   0x5   :  { %1018 = vmatpush3.bf16.msra.mxu0 %v1015_v3  ;;  %1026 = vmatpush3.bf16.msra.mxu1 %v1015_v3  ;;  %v15_v12 = vld [vmem:[%s1533_s2] sm:$0xff]  ;;  %v1162_v37 = vmov 97   ;;  %v1163_v38 = vmov 96   ;;  %v1164_v42 = vmov 98   ;;  %v16_v45 = vld [vmem:[%s1533_s2 + $0x8] sm:$0xff]  ;;  %vm1166_vm1 = vmmov 0  }
   0x6   :  { %1020 = vmatprep.subr.bf16.mxu0 %v1019_v6  ;;  %1024 = vmatprep.subr.bf16.mxu1 %v1019_v6  ;;  %v1211_v10 = vshrl.u32 %v31_v9, 7  ;;  %vm867_vm2 = vcmask 261120   ;;  %s1167_s19 = smov [#allocation2]   ;;  %vm947_vm3 = vcmask 57344  }
   0x7   :  { %1038 = vset.pattern.permute.xlu0 %v1162_v37  ;;  %1037 = vset.pattern.permute.xlu1 %v1163_v38  ;;  %s955_s20 = sshll.u32 %s1167_s19, 4  ;;  %s956_s20 = int_to_ptr.vmem [resolvable:$true] %s955_s20 }
   0x8   :  { %v171_v11 = vsub.s32 0, %v1211_v10  ;;  %v33_v13 = vsub.s32 3, %v1211_v10  ;;  %v177_v14 = vsub.s32 1, %v1211_v10  ;;  %v167_v15 = vsub.s32 2, %v1211_v10  ;;  %s1136_s21 = scalar_lea.vmem %s956_s20, 16  ;;  %s1140_s22 = scalar_lea.vmem %s956_s20, 32 }
   0x9   :  { %1022 = vmatpush3.bf16.msra.mxu0 %v1019_v6  ;;  %1027 = vmatpush3.bf16.msra.mxu1 %v1019_v6  ;;  %v214_v43 = vsub.s32 4, %v1211_v10  ;;  %v224_v44 = vsub.s32 5, %v1211_v10  ;;  %v234_v47 = vsub.s32 6, %v1211_v10  ;;  %v240_v48 = vsub.s32 7, %v1211_v10  ;;  %p1137_p0 = scmp.ne.s32.totalorder %s956_s20, %s1136_s21  ;;  %p1141_p1 = scmp.lt.s32.totalorder %s956_s20, %s956_s20 }
   0xa   :  { %996 = vmatprep.subr.mxu0 %v30_v7  ;;  %1025 = vmatprep.subr.mxu1 %v30_v7  ;;  %v1222_v16 = vrot.slane %v15_v12, %v171_v11  ;;  %v1224_v17 = vrot.slane %v15_v12, %v33_v13  ;;  %v1228_v18 = vrot.slane %v15_v12, %v177_v14  ;;  %p1142_p2 = scmp.lt.s32.totalorder %s1140_s22, %s1136_s21 }
   0xb   :  { %v1231_v21 = vrot.slane %v15_v12, %v167_v15  ;;  %v1251_v46 = vrot.slane %v15_v12, %v214_v43  ;;  %v1255_v49 = vrot.slane %v15_v12, %v224_v44  ;;  %v1257_v50 = vrot.slane %v16_v45, %v167_v15 }
   0xc   :  { %v173_v20 = vmul.f32 0.0, %v1222_v16  ;;  %v179_v24 = vmul.f32 0.0, %v1228_v18  ;;  %v1262_v56 = vrot.slane %v15_v12, %v234_v47  ;;  %v1264_v57 = vrot.slane %v15_v12, %v240_v48  ;;  %p1143_p3 = por %p1142_p2, %p1141_p1 }
   0xd   :  { %997 = vmatpush3.msra.mxu0 %v30_v7  ;;  %1028 = vmatpush3.msra.mxu1 %v30_v7  ;;  %v185_v26 = vmul.f32 0.0, %v1231_v21  ;;  %v1271_v62 = vrot.slane %v16_v45, %v171_v11  ;;  %v1275_v2 = vrot.slane %v16_v45, %v177_v14 }
   0xe   :  { %999 = vmatmul.mubr.msk.f32.vlgmr.msra.gmra.mrb[0].mxu0 %vm35_vm0, %v19_v8  ;;  %v242_v3 = vmul.f32 0.0, %v1264_v57  ;;  %p1144_p4 = pnand %p1143_p3, %p1137_p0 }
   0xf   :  { %v248_v6 = vmul.f32 0.0, %v1271_v62  ;;  %v254_v9 = vmul.f32 0.0, %v1275_v2 }
  0xe1   :  { %v1000_v19 = vpop.f32.mrb[0].mxu0 }
  0xe2   :  { %v126_v22 = vpop.f32.mrb[1].mxu0  ;;  %v132_v53 = vadd.f32 %v1000_v19, %v1224_v17 }
  0xe3   :  { %v127_v23 = vadd.f32 %v126_v22, %v1224_v17 }
  0xe5   :  { %v174_v25 = vadd.f32 %v173_v20, %v127_v23 }
  0xe7   :  { %v180_v27 = vadd.f32 %v179_v24, %v174_v25 }
  0xe9   :  { %v186_v28 = vadd.f32 %v185_v26, %v180_v27  ;;  %v20_v27 = vld [vmem:[%s1531_s0 + $0x10] sm:$0xff] }
  0xea   :  { %1001 = vmatprep.mubr.msk.f32.mxu0 %vm35_vm0, %v20_v27 }
  0xeb   :  { %1071 = vtanh.f32 %v186_v28  ;;  %v21_v28 = vld [vmem:[%s1531_s0 + $0x18] sm:$0xff] }
  0xec   :  { %1002 = vmatmul.mubr.msk.f32.gmra.mrb[2].mxu0 %vm35_vm0, %v21_v28 }
  0xf5   :  { %v1072_v29 = vpop.eup %1071 }
  0xf6   :  { %192 = vrot.lane.b32.xlu0 %v1072_v29, %s1160_s1  ;;  %v188_v30 = vmul.f32 0.5, %v1072_v29 }
  0xf8   :  { %v189_v31 = vadd.f32 0.5, %v188_v30 }
  0xfa   :  { %v190_v34 = vmul.f32 0.0, %v189_v31 }
 0x168   :  { %v193_v32 = vpop.permute.xlu0 %192 }
 0x169   :  { %v195_v33 = vmul.f32 %v193_v32, %v189_v31 }
 0x16b   :  { %197 = vrot.lane.b32.xlu0 %v195_v33, %s1161_s28 }
 0x1dd   :  { %v198_v35 = vpop.permute.xlu0 %197 }
 0x1de   :  { %v1238_v36 = vadd.f32 %v198_v35, %v190_v34 }
 0x1e0   :  { %1073 = vtanh.f32 %v1238_v36 }
 0x1ea   :  { %v1074_v39 = vpop.eup %1073 }
 0x1eb   :  { %203 = vrot.lane.b32.xlu1 %v1074_v39, %s1160_s1 }
 0x25d   :  { %v204_v40 = vpop.permute.xlu1 %203 }
 0x25e   :  { %v206_v41 = vmul.f32 %v204_v40, %v189_v31  ;;  %v1303_v40 = vpop.f32.mrb[2].mxu0 }
 0x260   :  { %219 = vperm.xlu0 %1038, %v206_v41   ;;  %209 = vperm.xlu1 %1037, %v206_v41  }
 0x264   :  { %1039 = vset.pattern.permute.xlu1 %v1164_v42 }
 0x265   :  { %229 = vperm.xlu1 %1039, %v206_v41  }
 0x269   :  { %1040 = vset.pattern.permute.xlu1 %v1163_v38 }
 0x2df   :  { %v220_v51 = vpop.permute.xlu0 %219  ;;  %v210_v52 = vpop.permute.xlu1 %209 }
 0x2e0   :  { %v216_v54 = vmul.f32 %v1251_v46, %v210_v52  ;;  %v276_v55 = vmul.f32 %v210_v52, %v1222_v16  ;;  %v226_v58 = vmul.f32 %v1255_v49, %v220_v51  ;;  %v278_v59 = vmul.f32 %v220_v51, %v1228_v18 }
 0x2e2   :  { %v217_v60 = vadd.f32 %v216_v54, %v1257_v50  ;;  %v277_v61 = vadd.f32 %v276_v55, %v132_v53 }
 0x2e4   :  { %v227_v63 = vadd.f32 %v226_v58, %v217_v60  ;;  %v279_v0 = vadd.f32 %v278_v59, %v277_v61  ;;  %v230_v1 = vpop.permute.xlu1 %229 }
 0x2e5   :  { %v236_v4 = vmul.f32 %v1262_v56, %v230_v1  ;;  %v280_v5 = vmul.f32 %v230_v1, %v1231_v21 }
 0x2e7   :  { %v237_v7 = vadd.f32 %v236_v4, %v227_v63  ;;  %v281_v8 = vadd.f32 %v280_v5, %v279_v0 }
 0x2e9   :  { %v243_v11 = vadd.f32 %v242_v3, %v237_v7  ;;  %1075 = vtanh.f32 %v281_v8 }
 0x2eb   :  { %v249_v12 = vadd.f32 %v248_v6, %v243_v11 }
 0x2ed   :  { %v255_v13 = vadd.f32 %v254_v9, %v249_v12 }
 0x2ef   :  { %1077 = vtanh.f32 %v255_v13 }
 0x2f3   :  { %v1076_v10 = vpop.eup %1075 }
 0x2f4   :  { %287 = vrot.lane.b32.xlu1 %v1076_v10, %s1160_s1  ;;  %v283_v15 = vmul.f32 0.5, %v1076_v10 }
 0x2f6   :  { %v284_v19 = vadd.f32 0.5, %v283_v15 }
 0x2f8   :  { %v285_v29 = vmul.f32 %v284_v19, %v1238_v36  ;;  %v136_v36 = vpop.f32.mrb[3].mxu0 }
 0x2f9   :  { %v1078_v14 = vpop.eup %1077  ;;  %v137_v47 = vadd.f32 %v136_v36, %v1224_v17 }
 0x2fa   :  { %261 = vrot.lane.b32.xlu0 %v1078_v14, %s1160_s1  ;;  %v257_v23 = vmul.f32 0.5, %v1078_v14 }
 0x2fc   :  { %v258_v24 = vadd.f32 0.5, %v257_v23 }
 0x2fe   :  { %v259_v32 = vmul.f32 0.0, %v258_v24 }
 0x366   :  { %v288_v20 = vpop.permute.xlu1 %287 }
 0x367   :  { %v290_v22 = vmul.f32 %v288_v20, %v284_v19 }
 0x369   :  { %292 = vrot.lane.b32.xlu1 %v290_v22, %s1161_s28 }
 0x36c   :  { %v262_v25 = vpop.permute.xlu0 %261 }
 0x36d   :  { %v264_v26 = vmul.f32 %v262_v25, %v258_v24 }
 0x36f   :  { %266 = vrot.lane.b32.xlu0 %v264_v26, %s1161_s28 }
 0x3db   :  { %v293_v30 = vpop.permute.xlu1 %292 }
 0x3dc   :  { %v1295_v31 = vadd.f32 %v293_v30, %v285_v29 }
 0x3de   :  { %1079 = vtanh.f32 %v1295_v31 }
 0x3e1   :  { %v267_v33 = vpop.permute.xlu0 %266 }
 0x3e2   :  { %v1298_v34 = vadd.f32 %v267_v33, %v259_v32 }
 0x3e4   :  { %1081 = vtanh.f32 %v1298_v34 }
 0x3e8   :  { %v1080_v35 = vpop.eup %1079 }
 0x3e9   :  { %298 = vrot.lane.b32.xlu1 %v1080_v35, %s1160_s1 }
 0x3ee   :  { %v1082_v39 = vpop.eup %1081 }
 0x3ef   :  { %272 = vrot.lane.b32.xlu0 %v1082_v39, %s1160_s1 }
 0x45b   :  { %v299_v41 = vpop.permute.xlu1 %298 }
 0x45c   :  { %v301_v43 = vmul.f32 %v299_v41, %v284_v19 }
 0x45e   :  { %310 = vperm.xlu0 %1038, %v301_v43   ;;  %304 = vperm.xlu1 %1040, %v301_v43  }
 0x461   :  { %v273_v44 = vpop.permute.xlu0 %272 }
 0x462   :  { %v275_v45 = vmul.f32 %v273_v44, %v258_v24  ;;  %1041 = vset.pattern.permute.xlu1 %v1164_v42  ;;  %1042 = vset.pattern.permute.xlu0 %v1163_v38 }
 0x463   :  { %316 = vperm.xlu1 %1041, %v301_v43  }
 0x464   :  { %323 = vperm.xlu0 %1042, %v275_v45  }
 0x467   :  { %1043 = vset.pattern.permute.xlu1 %v1162_v37 }
 0x468   :  { %329 = vperm.xlu1 %1043, %v275_v45  }
 0x46c   :  { %1044 = vset.pattern.permute.xlu1 %v1164_v42 }
 0x46d   :  { %335 = vperm.xlu1 %1044, %v275_v45  }
 0x471   :  { %1045 = vset.pattern.permute.xlu1 %v1162_v37 }
 0x4dd   :  { %v311_v48 = vpop.permute.xlu0 %310  ;;  %v305_v51 = vpop.permute.xlu1 %304 }
 0x4de   :  { %v307_v52 = vmul.f32 %v305_v51, %v1251_v46  ;;  %v360_v53 = vmul.f32 %v305_v51, %v1222_v16  ;;  %v313_v54 = vmul.f32 %v311_v48, %v1255_v49  ;;  %v362_v55 = vmul.f32 %v311_v48, %v1228_v18 }
 0x4e0   :  { %v308_v58 = vadd.f32 %v307_v52, %v1257_v50  ;;  %v361_v59 = vadd.f32 %v360_v53, %v137_v47  ;;  %v142_v47 = vadd.f32 %v1303_v40, %v1224_v17 }
 0x4e2   :  { %v314_v60 = vadd.f32 %v313_v54, %v308_v58  ;;  %v363_v61 = vadd.f32 %v362_v55, %v361_v59  ;;  %v317_v63 = vpop.permute.xlu1 %316 }
 0x4e3   :  { %v319_v0 = vmul.f32 %v317_v63, %v1262_v56  ;;  %v364_v1 = vmul.f32 %v317_v63, %v1231_v21  ;;  %v324_v3 = vpop.permute.xlu0 %323 }
 0x4e4   :  { %v326_v6 = vmul.f32 %v324_v3, %v1264_v57 }
 0x4e5   :  { %v320_v4 = vadd.f32 %v319_v0, %v314_v60  ;;  %v365_v5 = vadd.f32 %v364_v1, %v363_v61 }
 0x4e7   :  { %1083 = vtanh.f32 %v365_v5  ;;  %v330_v7 = vpop.permute.xlu1 %329  ;;  %v327_v8 = vadd.f32 %v326_v6, %v320_v4 }
 0x4e8   :  { %v332_v9 = vmul.f32 %v330_v7, %v1271_v62 }
 0x4ea   :  { %v333_v12 = vadd.f32 %v332_v9, %v327_v8 }
 0x4ec   :  { %v336_v11 = vpop.permute.xlu1 %335 }
 0x4ed   :  { %v338_v13 = vmul.f32 %v336_v11, %v1275_v2 }
 0x4ef   :  { %v339_v10 = vadd.f32 %v338_v13, %v333_v12 }
 0x4f1   :  { %v1084_v14 = vpop.eup %1083  ;;  %1085 = vtanh.f32 %v339_v10 }
 0x4f2   :  { %371 = vrot.lane.b32.xlu0 %v1084_v14, %s1160_s1  ;;  %v367_v19 = vmul.f32 0.5, %v1084_v14 }
 0x4f4   :  { %v368_v20 = vadd.f32 0.5, %v367_v19 }
 0x4f6   :  { %v369_v28 = vmul.f32 %v368_v20, %v1295_v31 }
 0x4fb   :  { %v1086_v15 = vpop.eup %1085 }
 0x4fc   :  { %345 = vrot.lane.b32.xlu1 %v1086_v15, %s1160_s1  ;;  %v341_v24 = vmul.f32 0.5, %v1086_v15 }
 0x4fe   :  { %v342_v25 = vadd.f32 0.5, %v341_v24 }
 0x500   :  { %v343_v32 = vmul.f32 %v342_v25, %v1298_v34 }
 0x564   :  { %v372_v22 = vpop.permute.xlu0 %371 }
 0x565   :  { %v374_v23 = vmul.f32 %v372_v22, %v368_v20 }
 0x567   :  { %376 = vrot.lane.b32.xlu0 %v374_v23, %s1161_s28 }
 0x56e   :  { %v346_v26 = vpop.permute.xlu1 %345 }
 0x56f   :  { %v348_v27 = vmul.f32 %v346_v26, %v342_v25  ;;  %v23_v26 = vld [vmem:[%s1531_s0 + $0x28] sm:$0xff] }
 0x571   :  { %350 = vrot.lane.b32.xlu1 %v348_v27, %s1161_s28 }
 0x5d9   :  { %v377_v29 = vpop.permute.xlu0 %376 }
 0x5da   :  { %v1326_v30 = vadd.f32 %v377_v29, %v369_v28 }
 0x5dc   :  { %1087 = vtanh.f32 %v1326_v30 }
 0x5e3   :  { %v351_v33 = vpop.permute.xlu1 %350 }
 0x5e4   :  { %v1330_v35 = vadd.f32 %v351_v33, %v343_v32 }
 0x5e6   :  { %v1088_v39 = vpop.eup %1087  ;;  %1089 = vtanh.f32 %v1330_v35 }
 0x5e7   :  { %382 = vrot.lane.b32.xlu0 %v1088_v39, %s1160_s1 }
 0x5f0   :  { %v1090_v36 = vpop.eup %1089 }
 0x5f1   :  { %356 = vrot.lane.b32.xlu1 %v1090_v36, %s1160_s1 }
 0x659   :  { %v383_v41 = vpop.permute.xlu0 %382 }
 0x65a   :  { %v385_v31 = vmul.f32 %v383_v41, %v368_v20 }
 0x65c   :  { %388 = vperm.xlu0 %1042, %v385_v31   ;;  %394 = vperm.xlu1 %1045, %v385_v31  }
 0x660   :  { %1046 = vset.pattern.permute.xlu0 %v1164_v42  ;;  %1047 = vset.pattern.permute.xlu1 %v1163_v38 }
 0x661   :  { %400 = vperm.xlu0 %1046, %v385_v31  }
 0x663   :  { %v357_v34 = vpop.permute.xlu1 %356 }
 0x664   :  { %v359_v43 = vmul.f32 %v357_v34, %v342_v25  ;;  %v22_v25 = vld [vmem:[%s1531_s0 + $0x20] sm:$0xff] }
 0x665   :  { %1004 = vmatprep.mubr.msk.f32.mxu0 %vm35_vm0, %v22_v25 }
 0x666   :  { %419 = vperm.xlu0 %1046, %v359_v43   ;;  %407 = vperm.xlu1 %1047, %v359_v43  }
 0x667   :  { %1005 = vmatmul.mubr.msk.f32.gmra.mrb[4].mxu0 %vm35_vm0, %v23_v26 }
 0x66a   :  { %1048 = vset.pattern.permute.xlu1 %v1162_v37  ;;  %1050 = vset.pattern.permute.xlu0 %v1162_v37 }
 0x66b   :  { %413 = vperm.xlu1 %1048, %v359_v43  }
 0x66f   :  { %1049 = vset.pattern.permute.xlu1 %v1163_v38 }
 0x6db   :  { %v389_v44 = vpop.permute.xlu0 %388  ;;  %v395_v45 = vpop.permute.xlu1 %394 }
 0x6dc   :  { %v444_v48 = vmul.f32 %v389_v44, %v1222_v16  ;;  %v391_v51 = vmul.f32 %v389_v44, %v1251_v46  ;;  %v446_v53 = vmul.f32 %v395_v45, %v1228_v18  ;;  %v397_v60 = vmul.f32 %v395_v45, %v1255_v49 }
 0x6de   :  { %v445_v52 = vadd.f32 %v444_v48, %v142_v47  ;;  %v392_v58 = vadd.f32 %v391_v51, %v1257_v50 }
 0x6e0   :  { %v447_v54 = vadd.f32 %v446_v53, %v445_v52  ;;  %v401_v55 = vpop.permute.xlu0 %400  ;;  %v398_v63 = vadd.f32 %v397_v60, %v392_v58 }
 0x6e1   :  { %v448_v59 = vmul.f32 %v401_v55, %v1231_v21  ;;  %v403_v0 = vmul.f32 %v401_v55, %v1262_v56 }
 0x6e3   :  { %v449_v61 = vadd.f32 %v448_v59, %v447_v54  ;;  %v404_v3 = vadd.f32 %v403_v0, %v398_v63 }
 0x6e5   :  { %1091 = vtanh.f32 %v449_v61  ;;  %v408_v40 = vpop.permute.xlu1 %407  ;;  %v420_v4 = vpop.permute.xlu0 %419 }
 0x6e6   :  { %v410_v1 = vmul.f32 %v408_v40, %v1264_v57  ;;  %v422_v8 = vmul.f32 %v420_v4, %v1275_v2 }
 0x6e8   :  { %v411_v6 = vadd.f32 %v410_v1, %v404_v3 }
 0x6ea   :  { %v414_v5 = vpop.permute.xlu1 %413 }
 0x6eb   :  { %v416_v7 = vmul.f32 %v414_v5, %v1271_v62 }
 0x6ed   :  { %v417_v9 = vadd.f32 %v416_v7, %v411_v6 }
 0x6ef   :  { %v1092_v11 = vpop.eup %1091  ;;  %v423_v12 = vadd.f32 %v422_v8, %v417_v9 }
 0x6f0   :  { %455 = vrot.lane.b32.xlu1 %v1092_v11, %s1160_s1  ;;  %v451_v10 = vmul.f32 0.5, %v1092_v11 }
 0x6f1   :  { %1093 = vtanh.f32 %v423_v12 }
 0x6f2   :  { %v452_v14 = vadd.f32 0.5, %v451_v10 }
 0x6f4   :  { %v453_v27 = vmul.f32 %v452_v14, %v1326_v30 }
 0x6fb   :  { %v1094_v13 = vpop.eup %1093 }
 0x6fc   :  { %429 = vrot.lane.b32.xlu0 %v1094_v13, %s1160_s1  ;;  %v425_v20 = vmul.f32 0.5, %v1094_v13 }
 0x6fe   :  { %v426_v22 = vadd.f32 0.5, %v425_v20 }
 0x700   :  { %v427_v32 = vmul.f32 %v426_v22, %v1330_v35 }
 0x73a   :  { %v1374_v31 = vpop.f32.mrb[4].mxu0 }
 0x73b   :  { %v146_v30 = vpop.f32.mrb[5].mxu0 }
 0x73c   :  { %v147_v45 = vadd.f32 %v146_v30, %v1224_v17 }
 0x762   :  { %v456_v15 = vpop.permute.xlu1 %455 }
 0x763   :  { %v458_v19 = vmul.f32 %v456_v15, %v452_v14 }
 0x765   :  { %460 = vrot.lane.b32.xlu1 %v458_v19, %s1161_s28 }
 0x76e   :  { %v430_v23 = vpop.permute.xlu0 %429 }
 0x76f   :  { %v432_v24 = vmul.f32 %v430_v23, %v426_v22 }
 0x771   :  { %434 = vrot.lane.b32.xlu0 %v432_v24, %s1161_s28 }
 0x7d7   :  { %v461_v28 = vpop.permute.xlu1 %460 }
 0x7d8   :  { %v1365_v29 = vadd.f32 %v461_v28, %v453_v27 }
 0x7da   :  { %1095 = vtanh.f32 %v1365_v29 }
 0x7e3   :  { %v435_v33 = vpop.permute.xlu0 %434 }
 0x7e4   :  { %v1096_v39 = vpop.eup %1095  ;;  %v1369_v36 = vadd.f32 %v435_v33, %v427_v32 }
 0x7e5   :  { %466 = vrot.lane.b32.xlu1 %v1096_v39, %s1160_s1 }
 0x7e6   :  { %1097 = vtanh.f32 %v1369_v36 }
 0x7f0   :  { %v1098_v41 = vpop.eup %1097 }
 0x7f1   :  { %440 = vrot.lane.b32.xlu0 %v1098_v41, %s1160_s1 }
 0x857   :  { %v467_v34 = vpop.permute.xlu1 %466 }
 0x858   :  { %v469_v43 = vmul.f32 %v467_v34, %v452_v14 }
 0x85a   :  { %478 = vperm.xlu0 %1050, %v469_v43   ;;  %472 = vperm.xlu1 %1049, %v469_v43  }
 0x85e   :  { %1051 = vset.pattern.permute.xlu1 %v1164_v42 }
 0x85f   :  { %484 = vperm.xlu1 %1051, %v469_v43  }
 0x863   :  { %v441_v35 = vpop.permute.xlu0 %440  ;;  %1052 = vset.pattern.permute.xlu1 %v1163_v38 }
 0x864   :  { %v443_v44 = vmul.f32 %v441_v35, %v426_v22 }
 0x866   :  { %497 = vperm.xlu0 %1050, %v443_v44   ;;  %491 = vperm.xlu1 %1052, %v443_v44  }
 0x86a   :  { %1053 = vset.pattern.permute.xlu1 %v1164_v42  ;;  %1054 = vset.pattern.permute.xlu0 %v1163_v38 }
 0x86b   :  { %503 = vperm.xlu1 %1053, %v443_v44  }
 0x86f   :  { %1055 = vset.pattern.permute.xlu1 %v1162_v37 }
 0x8d9   :  { %v479_v47 = vpop.permute.xlu0 %478  ;;  %v473_v48 = vpop.permute.xlu1 %472 }
 0x8da   :  { %v475_v51 = vmul.f32 %v473_v48, %v1251_v46  ;;  %v528_v52 = vmul.f32 %v473_v48, %v1222_v16  ;;  %v530_v53 = vmul.f32 %v479_v47, %v1228_v18  ;;  %v481_v61 = vmul.f32 %v479_v47, %v1255_v49 }
 0x8dc   :  { %v529_v54 = vadd.f32 %v528_v52, %v147_v45  ;;  %v476_v55 = vadd.f32 %v475_v51, %v1257_v50  ;;  %v152_v45 = vadd.f32 %v1374_v31, %v1224_v17 }
 0x8de   :  { %v531_v58 = vadd.f32 %v530_v53, %v529_v54  ;;  %v485_v59 = vpop.permute.xlu1 %484  ;;  %v482_v0 = vadd.f32 %v481_v61, %v476_v55 }
 0x8df   :  { %v532_v60 = vmul.f32 %v485_v59, %v1231_v21  ;;  %v487_v40 = vmul.f32 %v485_v59, %v1262_v56 }
 0x8e1   :  { %v533_v63 = vadd.f32 %v532_v60, %v531_v58  ;;  %v488_v4 = vadd.f32 %v487_v40, %v482_v0 }
 0x8e3   :  { %1099 = vtanh.f32 %v533_v63 }
 0x8e5   :  { %v498_v1 = vpop.permute.xlu0 %497  ;;  %v492_v3 = vpop.permute.xlu1 %491 }
 0x8e6   :  { %v494_v5 = vmul.f32 %v492_v3, %v1264_v57  ;;  %v500_v6 = vmul.f32 %v498_v1, %v1271_v62 }
 0x8e8   :  { %v495_v7 = vadd.f32 %v494_v5, %v488_v4 }
 0x8ea   :  { %v501_v8 = vadd.f32 %v500_v6, %v495_v7  ;;  %v504_v9 = vpop.permute.xlu1 %503 }
 0x8eb   :  { %v506_v11 = vmul.f32 %v504_v9, %v1275_v2 }
 0x8ed   :  { %v1100_v12 = vpop.eup %1099  ;;  %v507_v13 = vadd.f32 %v506_v11, %v501_v8 }
 0x8ee   :  { %539 = vrot.lane.b32.xlu0 %v1100_v12, %s1160_s1  ;;  %v535_v14 = vmul.f32 0.5, %v1100_v12 }
 0x8ef   :  { %1101 = vtanh.f32 %v507_v13 }
 0x8f0   :  { %v536_v15 = vadd.f32 0.5, %v535_v14 }
 0x8f2   :  { %v537_v26 = vmul.f32 %v536_v15, %v1365_v29 }
 0x8f9   :  { %v1102_v10 = vpop.eup %1101 }
 0x8fa   :  { %513 = vrot.lane.b32.xlu1 %v1102_v10, %s1160_s1  ;;  %v509_v22 = vmul.f32 0.5, %v1102_v10 }
 0x8fc   :  { %v510_v23 = vadd.f32 0.5, %v509_v22 }
 0x8fe   :  { %v511_v32 = vmul.f32 %v510_v23, %v1369_v36 }
 0x960   :  { %v540_v19 = vpop.permute.xlu0 %539 }
 0x961   :  { %v542_v20 = vmul.f32 %v540_v19, %v536_v15 }
 0x963   :  { %544 = vrot.lane.b32.xlu0 %v542_v20, %s1161_s28 }
 0x96c   :  { %v514_v24 = vpop.permute.xlu1 %513 }
 0x96d   :  { %v516_v25 = vmul.f32 %v514_v24, %v510_v23  ;;  %v25_v24 = vld [vmem:[%s1531_s0 + $0x38] sm:$0xff] }
 0x96f   :  { %518 = vrot.lane.b32.xlu1 %v516_v25, %s1161_s28 }
 0x9d5   :  { %v545_v27 = vpop.permute.xlu0 %544 }
 0x9d6   :  { %v1397_v28 = vadd.f32 %v545_v27, %v537_v26 }
 0x9d8   :  { %1103 = vtanh.f32 %v1397_v28 }
 0x9e1   :  { %v519_v33 = vpop.permute.xlu1 %518 }
 0x9e2   :  { %v1104_v39 = vpop.eup %1103  ;;  %v1401_v41 = vadd.f32 %v519_v33, %v511_v32 }
 0x9e3   :  { %550 = vrot.lane.b32.xlu0 %v1104_v39, %s1160_s1 }
 0x9e4   :  { %1105 = vtanh.f32 %v1401_v41 }
 0x9ee   :  { %v1106_v30 = vpop.eup %1105 }
 0x9ef   :  { %524 = vrot.lane.b32.xlu1 %v1106_v30, %s1160_s1 }
 0xa55   :  { %v551_v34 = vpop.permute.xlu0 %550 }
 0xa56   :  { %v553_v29 = vmul.f32 %v551_v34, %v536_v15 }
 0xa58   :  { %556 = vperm.xlu0 %1054, %v553_v29   ;;  %562 = vperm.xlu1 %1055, %v553_v29  }
 0xa5c   :  { %1056 = vset.pattern.permute.xlu1 %v1164_v42 }
 0xa5d   :  { %568 = vperm.xlu1 %1056, %v553_v29  }
 0xa61   :  { %v525_v43 = vpop.permute.xlu1 %524  ;;  %1057 = vset.pattern.permute.xlu1 %v1162_v37 }
 0xa62   :  { %v527_v36 = vmul.f32 %v525_v43, %v510_v23  ;;  %v24_v23 = vld [vmem:[%s1531_s0 + $0x30] sm:$0xff] }
 0xa63   :  { %1007 = vmatprep.mubr.msk.f32.mxu1 %vm35_vm0, %v24_v23 }
 0xa64   :  { %581 = vperm.xlu1 %1057, %v527_v36   ;;  %575 = vperm.xlu0 %1054, %v527_v36  }
 0xa65   :  { %1008 = vmatmul.mubr.msk.f32.vlgmr.msra.gmra.mrb[0].mxu1 %vm35_vm0, %v25_v24 }
 0xa68   :  { %1058 = vset.pattern.permute.xlu0 %v1164_v42 }
 0xa69   :  { %587 = vperm.xlu0 %1058, %v527_v36  }
 0xa6d   :  { %1059 = vset.pattern.permute.xlu0 %v1163_v38 }
 0xad7   :  { %v557_v35 = vpop.permute.xlu0 %556  ;;  %v563_v44 = vpop.permute.xlu1 %562 }
 0xad8   :  { %v559_v47 = vmul.f32 %v557_v35, %v1251_v46  ;;  %v612_v48 = vmul.f32 %v557_v35, %v1222_v16  ;;  %v614_v52 = vmul.f32 %v563_v44, %v1228_v18  ;;  %v565_v59 = vmul.f32 %v563_v44, %v1255_v49 }
 0xada   :  { %v613_v51 = vadd.f32 %v612_v48, %v152_v45  ;;  %v560_v53 = vadd.f32 %v559_v47, %v1257_v50 }
 0xadc   :  { %v615_v54 = vadd.f32 %v614_v52, %v613_v51  ;;  %v569_v55 = vpop.permute.xlu1 %568  ;;  %v566_v61 = vadd.f32 %v565_v59, %v560_v53 }
 0xadd   :  { %v616_v58 = vmul.f32 %v569_v55, %v1231_v21  ;;  %v571_v63 = vmul.f32 %v569_v55, %v1262_v56 }
 0xadf   :  { %v617_v60 = vadd.f32 %v616_v58, %v615_v54  ;;  %v572_v40 = vadd.f32 %v571_v63, %v566_v61 }
 0xae1   :  { %1107 = vtanh.f32 %v617_v60 }
 0xae3   :  { %v576_v31 = vpop.permute.xlu0 %575  ;;  %v582_v0 = vpop.permute.xlu1 %581 }
 0xae4   :  { %v578_v1 = vmul.f32 %v576_v31, %v1264_v57  ;;  %v584_v4 = vmul.f32 %v582_v0, %v1271_v62 }
 0xae6   :  { %v579_v3 = vadd.f32 %v578_v1, %v572_v40 }
 0xae8   :  { %v585_v5 = vadd.f32 %v584_v4, %v579_v3  ;;  %v588_v6 = vpop.permute.xlu0 %587 }
 0xae9   :  { %v590_v7 = vmul.f32 %v588_v6, %v1275_v2 }
 0xaeb   :  { %v1108_v8 = vpop.eup %1107  ;;  %v591_v9 = vadd.f32 %v590_v7, %v585_v5 }
 0xaec   :  { %623 = vrot.lane.b32.xlu1 %v1108_v8, %s1160_s1  ;;  %v619_v12 = vmul.f32 0.5, %v1108_v8 }
 0xaed   :  { %1109 = vtanh.f32 %v591_v9 }
 0xaee   :  { %v620_v13 = vadd.f32 0.5, %v619_v12 }
 0xaf0   :  { %v621_v25 = vmul.f32 %v620_v13, %v1397_v28 }
 0xaf7   :  { %v1110_v11 = vpop.eup %1109 }
 0xaf8   :  { %597 = vrot.lane.b32.xlu1 %v1110_v11, %s1160_s1  ;;  %v593_v15 = vmul.f32 0.5, %v1110_v11 }
 0xafa   :  { %v594_v19 = vadd.f32 0.5, %v593_v15 }
 0xafc   :  { %v595_v32 = vmul.f32 %v594_v19, %v1401_v41 }
 0xb38   :  { %v1444_v29 = vpop.f32.mrb[0].mxu1 }
 0xb39   :  { %v156_v28 = vpop.f32.mrb[1].mxu1 }
 0xb3a   :  { %v157_v44 = vadd.f32 %v156_v28, %v1224_v17 }
 0xb5e   :  { %v624_v10 = vpop.permute.xlu1 %623 }
 0xb5f   :  { %v626_v14 = vmul.f32 %v624_v10, %v620_v13 }
 0xb61   :  { %628 = vrot.lane.b32.xlu0 %v626_v14, %s1161_s28 }
 0xb6a   :  { %v598_v20 = vpop.permute.xlu1 %597 }
 0xb6b   :  { %v600_v22 = vmul.f32 %v598_v20, %v594_v19 }
 0xb6d   :  { %602 = vrot.lane.b32.xlu1 %v600_v22, %s1161_s28 }
 0xbd3   :  { %v629_v26 = vpop.permute.xlu0 %628 }
 0xbd4   :  { %v1435_v27 = vadd.f32 %v629_v26, %v621_v25 }
 0xbd6   :  { %1111 = vtanh.f32 %v1435_v27 }
 0xbdf   :  { %v603_v33 = vpop.permute.xlu1 %602 }
 0xbe0   :  { %v1112_v39 = vpop.eup %1111  ;;  %v1439_v30 = vadd.f32 %v603_v33, %v595_v32 }
 0xbe1   :  { %634 = vrot.lane.b32.xlu0 %v1112_v39, %s1160_s1 }
 0xbe2   :  { %1113 = vtanh.f32 %v1439_v30 }
 0xbec   :  { %v1114_v34 = vpop.eup %1113 }
 0xbed   :  { %608 = vrot.lane.b32.xlu1 %v1114_v34, %s1160_s1 }
 0xc53   :  { %v635_v43 = vpop.permute.xlu0 %634 }
 0xc54   :  { %v637_v36 = vmul.f32 %v635_v43, %v620_v13 }
 0xc56   :  { %640 = vperm.xlu0 %1059, %v637_v36   ;;  %646 = vperm.xlu1 %1057, %v637_v36  }
 0xc5a   :  { %1060 = vset.pattern.permute.xlu1 %v1164_v42 }
 0xc5b   :  { %652 = vperm.xlu1 %1060, %v637_v36  }
 0xc5f   :  { %v609_v41 = vpop.permute.xlu1 %608  ;;  %1061 = vset.pattern.permute.xlu1 %v1162_v37 }
 0xc60   :  { %v611_v35 = vmul.f32 %v609_v41, %v594_v19 }
 0xc62   :  { %665 = vperm.xlu1 %1061, %v611_v35   ;;  %659 = vperm.xlu0 %1059, %v611_v35  }
 0xc66   :  { %1062 = vset.pattern.permute.xlu0 %v1164_v42 }
 0xc67   :  { %671 = vperm.xlu0 %1062, %v611_v35  }
 0xc6b   :  { %1063 = vset.pattern.permute.xlu0 %v1163_v38 }
 0xcd5   :  { %v641_v45 = vpop.permute.xlu0 %640  ;;  %v647_v47 = vpop.permute.xlu1 %646 }
 0xcd6   :  { %v643_v48 = vmul.f32 %v641_v45, %v1251_v46  ;;  %v696_v51 = vmul.f32 %v641_v45, %v1222_v16  ;;  %v698_v53 = vmul.f32 %v647_v47, %v1228_v18  ;;  %v649_v60 = vmul.f32 %v647_v47, %v1255_v49 }
 0xcd8   :  { %v697_v52 = vadd.f32 %v696_v51, %v157_v44  ;;  %v644_v54 = vadd.f32 %v643_v48, %v1257_v50  ;;  %v162_v44 = vadd.f32 %v1444_v29, %v1224_v17 }
 0xcda   :  { %v699_v55 = vadd.f32 %v698_v53, %v697_v52  ;;  %v653_v58 = vpop.permute.xlu1 %652  ;;  %v650_v63 = vadd.f32 %v649_v60, %v644_v54 }
 0xcdb   :  { %v700_v59 = vmul.f32 %v653_v58, %v1231_v21  ;;  %v655_v31 = vmul.f32 %v653_v58, %v1262_v56 }
 0xcdd   :  { %v701_v61 = vadd.f32 %v700_v59, %v699_v55  ;;  %v656_v1 = vadd.f32 %v655_v31, %v650_v63 }
 0xcdf   :  { %1115 = vtanh.f32 %v701_v61 }
 0xce1   :  { %v660_v0 = vpop.permute.xlu0 %659  ;;  %v666_v40 = vpop.permute.xlu1 %665 }
 0xce2   :  { %v662_v3 = vmul.f32 %v660_v0, %v1264_v57  ;;  %v668_v5 = vmul.f32 %v666_v40, %v1271_v62 }
 0xce4   :  { %v663_v4 = vadd.f32 %v662_v3, %v656_v1 }
 0xce6   :  { %v669_v6 = vadd.f32 %v668_v5, %v663_v4  ;;  %v672_v7 = vpop.permute.xlu0 %671 }
 0xce7   :  { %v674_v8 = vmul.f32 %v672_v7, %v1275_v2 }
 0xce9   :  { %v1116_v9 = vpop.eup %1115  ;;  %v675_v11 = vadd.f32 %v674_v8, %v669_v6 }
 0xcea   :  { %707 = vrot.lane.b32.xlu1 %v1116_v9, %s1160_s1  ;;  %v703_v13 = vmul.f32 0.5, %v1116_v9 }
 0xceb   :  { %1117 = vtanh.f32 %v675_v11 }
 0xcec   :  { %v704_v10 = vadd.f32 0.5, %v703_v13 }
 0xcee   :  { %v705_v24 = vmul.f32 %v704_v10, %v1435_v27 }
 0xcf5   :  { %v1118_v12 = vpop.eup %1117 }
 0xcf6   :  { %681 = vrot.lane.b32.xlu1 %v1118_v12, %s1160_s1  ;;  %v677_v19 = vmul.f32 0.5, %v1118_v12 }
 0xcf8   :  { %v678_v20 = vadd.f32 0.5, %v677_v19 }
 0xcfa   :  { %v679_v32 = vmul.f32 %v678_v20, %v1439_v30 }
 0xd5c   :  { %v708_v14 = vpop.permute.xlu1 %707 }
 0xd5d   :  { %v710_v15 = vmul.f32 %v708_v14, %v704_v10 }
 0xd5f   :  { %712 = vrot.lane.b32.xlu0 %v710_v15, %s1161_s28 }
 0xd68   :  { %v682_v22 = vpop.permute.xlu1 %681 }
 0xd69   :  { %v684_v23 = vmul.f32 %v682_v22, %v678_v20 }
 0xd6b   :  { %686 = vrot.lane.b32.xlu1 %v684_v23, %s1161_s28 }
 0xdd1   :  { %v713_v25 = vpop.permute.xlu0 %712 }
 0xdd2   :  { %v1466_v26 = vadd.f32 %v713_v25, %v705_v24 }
 0xdd4   :  { %1119 = vtanh.f32 %v1466_v26 }
 0xddd   :  { %v687_v33 = vpop.permute.xlu1 %686 }
 0xdde   :  { %v1120_v39 = vpop.eup %1119  ;;  %v1470_v34 = vadd.f32 %v687_v33, %v679_v32 }
 0xddf   :  { %718 = vrot.lane.b32.xlu0 %v1120_v39, %s1160_s1 }
 0xde0   :  { %1121 = vtanh.f32 %v1470_v34 }
 0xdea   :  { %v1122_v28 = vpop.eup %1121 }
 0xdeb   :  { %692 = vrot.lane.b32.xlu1 %v1122_v28, %s1160_s1 }
 0xe51   :  { %v719_v43 = vpop.permute.xlu0 %718 }
 0xe52   :  { %v721_v27 = vmul.f32 %v719_v43, %v704_v10 }
 0xe54   :  { %724 = vperm.xlu0 %1063, %v721_v27   ;;  %730 = vperm.xlu1 %1061, %v721_v27  }
 0xe58   :  { %1064 = vset.pattern.permute.xlu1 %v1164_v42 }
 0xe59   :  { %736 = vperm.xlu1 %1064, %v721_v27  }
 0xe5d   :  { %v693_v36 = vpop.permute.xlu1 %692  ;;  %1065 = vset.pattern.permute.xlu1 %v1162_v37 }
 0xe5e   :  { %v695_v30 = vmul.f32 %v693_v36, %v678_v20 }
 0xe60   :  { %749 = vperm.xlu1 %1065, %v695_v30   ;;  %743 = vperm.xlu0 %1063, %v695_v30  }
 0xe64   :  { %1066 = vset.pattern.permute.xlu0 %v1164_v42 }
 0xe65   :  { %755 = vperm.xlu0 %1066, %v695_v30  }
 0xe69   :  { %1067 = vset.pattern.permute.xlu0 %v1163_v38 }
 0xed3   :  { %v725_v41 = vpop.permute.xlu0 %724  ;;  %v731_v35 = vpop.permute.xlu1 %730 }
 0xed4   :  { %v727_v45 = vmul.f32 %v725_v41, %v1251_v46  ;;  %v780_v47 = vmul.f32 %v725_v41, %v1222_v16  ;;  %v782_v51 = vmul.f32 %v731_v35, %v1228_v18  ;;  %v733_v38 = vmul.f32 %v731_v35, %v1255_v49 }
 0xed6   :  { %v781_v48 = vadd.f32 %v780_v47, %v162_v44  ;;  %v728_v52 = vadd.f32 %v727_v45, %v1257_v50 }
 0xed8   :  { %v783_v53 = vadd.f32 %v782_v51, %v781_v48  ;;  %v737_v54 = vpop.permute.xlu1 %736  ;;  %v734_v59 = vadd.f32 %v733_v38, %v728_v52 }
 0xed9   :  { %v784_v55 = vmul.f32 %v737_v54, %v1231_v21  ;;  %v739_v60 = vmul.f32 %v737_v54, %v1262_v56 }
 0xedb   :  { %v785_v58 = vadd.f32 %v784_v55, %v783_v53  ;;  %v740_v61 = vadd.f32 %v739_v60, %v734_v59  ;;  %v17_v60 = vld [vmem:[%s1533_s2 + $0x10] sm:$0xff] }
 0xedd   :  { %1123 = vtanh.f32 %v785_v58 }
 0xedf   :  { %v744_v17 = vpop.permute.xlu0 %743  ;;  %v750_v29 = vpop.permute.xlu1 %749 }
 0xee0   :  { %v746_v16 = vmul.f32 %v744_v17, %v1264_v57  ;;  %v752_v18 = vmul.f32 %v750_v29, %v1271_v62  ;;  %v1135_v17 = vld [vmem:[%s1533_s2 + $0x8] sm:$0xff] }
 0xee1   :  { %v944_v29 = vrot.slane %v1135_v17, 3 }
 0xee2   :  { %v747_v63 = vadd.f32 %v746_v16, %v740_v61 }
 0xee4   :  { %v753_v31 = vadd.f32 %v752_v18, %v747_v63  ;;  %v756_v0 = vpop.permute.xlu0 %755 }
 0xee5   :  { %v758_v40 = vmul.f32 %v756_v0, %v1275_v2 }
 0xee7   :  { %v1124_v21 = vpop.eup %1123  ;;  %v759_v1 = vadd.f32 %v758_v40, %v753_v31 }
 0xee8   :  { %791 = vrot.lane.b32.xlu1 %v1124_v21, %s1160_s1  ;;  %v787_v4 = vmul.f32 0.5, %v1124_v21 }
 0xee9   :  { %1125 = vtanh.f32 %v759_v1 }
 0xeea   :  { %v788_v5 = vadd.f32 0.5, %v787_v4 }
 0xeec   :  { %v789_v13 = vmul.f32 %v788_v5, %v1466_v26 }
 0xef3   :  { %v1126_v3 = vpop.eup %1125 }
 0xef4   :  { %765 = vrot.lane.b32.xlu1 %v1126_v3, %s1160_s1  ;;  %v761_v8 = vmul.f32 0.5, %v1126_v3 }
 0xef6   :  { %v762_v9 = vadd.f32 0.5, %v761_v8 }
 0xef8   :  { %v763_v15 = vmul.f32 %v762_v9, %v1470_v34 }
 0xf5a   :  { %v792_v6 = vpop.permute.xlu1 %791 }
 0xf5b   :  { %v794_v7 = vmul.f32 %v792_v6, %v788_v5 }
 0xf5d   :  { %796 = vrot.lane.b32.xlu0 %v794_v7, %s1161_s28 }
 0xf66   :  { %v766_v11 = vpop.permute.xlu1 %765 }
 0xf67   :  { %v768_v12 = vmul.f32 %v766_v11, %v762_v9 }
 0xf69   :  { %770 = vrot.lane.b32.xlu1 %v768_v12, %s1161_s28 }
 0xfcf   :  { %v797_v10 = vpop.permute.xlu0 %796 }
 0xfd0   :  { %v799_v14 = vadd.f32 %v797_v10, %v789_v13 }
 0xfd2   :  { %1127 = vtanh.f32 %v799_v14 }
 0xfdb   :  { %v771_v19 = vpop.permute.xlu1 %770 }
 0xfdc   :  { %v1128_v20 = vpop.eup %1127  ;;  %v773_v22 = vadd.f32 %v771_v19, %v763_v15 }
 0xfdd   :  { %802 = vrot.lane.b32.xlu0 %v1128_v20, %s1160_s1 }
 0xfde   :  { %1129 = vtanh.f32 %v773_v22 }
 0xfe8   :  { %v1130_v23 = vpop.eup %1129 }
 0xfe9   :  { %776 = vrot.lane.b32.xlu1 %v1130_v23, %s1160_s1 }
0x104f   :  { %v803_v24 = vpop.permute.xlu0 %802 }
0x1050   :  { %v805_v25 = vmul.f32 %v803_v24, %v788_v5 }
0x1052   :  { %808 = vperm.xlu0 %1067, %v805_v25   ;;  %814 = vperm.xlu1 %1065, %v805_v25  }
0x1056   :  { %1068 = vset.pattern.permute.xlu1 %v1164_v42 }
0x1057   :  { %820 = vperm.xlu1 %1068, %v805_v25  }
0x105b   :  { %v777_v26 = vpop.permute.xlu1 %776  ;;  %1069 = vset.pattern.permute.xlu1 %v1162_v37 }
0x105c   :  { %v779_v32 = vmul.f32 %v777_v26, %v762_v9 }
0x105e   :  { %833 = vperm.xlu1 %1069, %v779_v32   ;;  %827 = vperm.xlu0 %1067, %v779_v32  }
0x1062   :  { %1070 = vset.pattern.permute.xlu0 %v1164_v42 }
0x1063   :  { %839 = vperm.xlu0 %1070, %v779_v32  }
0x10d1   :  { %v809_v33 = vpop.permute.xlu0 %808  ;;  %v815_v39 = vpop.permute.xlu1 %814 }
0x10d2   :  { %v811_v34 = vmul.f32 %v809_v33, %v1251_v46  ;;  %v817_v27 = vmul.f32 %v815_v39, %v1255_v49 }
0x10d4   :  { %v812_v28 = vadd.f32 %v811_v34, %v1257_v50 }
0x10d6   :  { %v821_v43 = vpop.permute.xlu1 %820  ;;  %v818_v36 = vadd.f32 %v817_v27, %v812_v28 }
0x10d7   :  { %v823_v30 = vmul.f32 %v821_v43, %v1262_v56 }
0x10d9   :  { %v824_v35 = vadd.f32 %v823_v30, %v818_v36 }
0x10dd   :  { %v828_v41 = vpop.permute.xlu0 %827  ;;  %v834_v37 = vpop.permute.xlu1 %833 }
0x10de   :  { %v830_v44 = vmul.f32 %v828_v41, %v1264_v57  ;;  %v836_v42 = vmul.f32 %v834_v37, %v1271_v62  ;;  %v1165_v62 = vmov 0.0  }
0x10df   :  { %1010 = vmatprep.subr.mxu1 %v1165_v62  ;;  %1012 = vmatprep.mubr.msk.f32.mxu1 %vm1166_vm1, %v1165_v62 }
0x10e0   :  { %v831_v45 = vadd.f32 %v830_v44, %v824_v35 }
0x10e2   :  { %v837_v47 = vadd.f32 %v836_v42, %v831_v45  ;;  %v840_v48 = vpop.permute.xlu0 %839 }
0x10e3   :  { %v842_v46 = vmul.f32 %v840_v48, %v1275_v2 }
0x10e5   :  { %v843_v51 = vadd.f32 %v842_v46, %v837_v47 }
0x10e7   :  { %1131 = vtanh.f32 %v843_v51 }
0x10f1   :  { %v1132_v50 = vpop.eup %1131 }
0x10f2   :  { %849 = vrot.lane.b32.xlu1 %v1132_v50, %s1160_s1  ;;  %v845_v49 = vmul.f32 0.5, %v1132_v50 }
0x10f4   :  { %v846_v52 = vadd.f32 0.5, %v845_v49 }
0x10f6   :  { %v847_v54 = vmul.f32 %v846_v52, %v773_v22 }
0x1164   :  { %v850_v56 = vpop.permute.xlu1 %849 }
0x1165   :  { %v852_v53 = vmul.f32 %v850_v56, %v846_v52 }
0x1167   :  { %854 = vrot.lane.b32.xlu1 %v852_v53, %s1161_s28 }
0x11d9   :  { %v855_v57 = vpop.permute.xlu1 %854 }
0x11da   :  { %v857_v55 = vadd.f32 %v855_v57, %v847_v54 }
0x11dc   :  { %1133 = vtanh.f32 %v857_v55 }
0x11e6   :  { %v1134_v38 = vpop.eup %1133 }
0x11e7   :  { %860 = vrot.lane.b32.xlu0 %v1134_v38, %s1160_s1 }
0x1259   :  { %v861_v2 = vpop.permute.xlu0 %860 }
0x125a   :  { %v863_v58 = vmul.f32 %v861_v2, %v846_v52 }
0x125c   :  { %865 = vrot.lane.b32.xlu1 %v863_v58, %s1161_s28 }
0x12ce   :  { %v866_v59 = vpop.permute.xlu1 %865 }
0x12cf   :  { %1011 = vmatpush3.xpose.msk.msra.mxu1 %vm867_vm2, %v866_v59 }
0x12d2   :  { %1013 = vmatmul.mubr.msk.f32.vlgmr.msra.gmra.mrb[2].mxu1 %vm867_vm2, %v17_v60 }
0x13a5   :  { %v939_v61 = vpop.f32.mrb[2].mxu1 }
0x13a6   :  { %v946_v16 = vadd.f32 %v944_v29, %v939_v61  ;;  %v1014_v63 = vpop.f32.mrb[3].mxu1 }
0x13a8   :  { %948 = vst.msk [vmem:[#allocation2] sm:$0x1] %vm947_vm3, %v946_v16 }
0x13a9   :  { %1147 = shalt.err (!%p1144_p4)
}
0x13aa   :  { %s1148_s2 = scalar_lea.hbm %s1534_s3, 16 }
0x13ab   :  { %p1149_p5 = scmp.ne.s32.totalorder %s1534_s3, %s1148_s2  ;;  %p1152_p6 = scmp.lt.u32.totalorder %s1148_s2, %s1534_s3 }
0x13ad   :  { %p1154_p7 = pnand %p1152_p6, %p1149_p5 }
0x13af   :  { %1157 = shalt.err (!%p1154_p7)
}
0x13b0   :  { %958 = dma.vmem_to_hbm [thread:$0]  %s956_s20, 16, %s1534_s3, [#allocation3]  }
0x13b1   :  { %1158 = dma.done.wait [#allocation3], 16  }
0x13b2   :  { %1159 = vsyncadd [#allocation3], 4294967280 }
0x13b3   :  { %962 = vsyncpa [#allocation3], 1 }

</bundles_post_ra>
